<compile_context>
chip_gen: v7x
topology: tpu7x:2x2x1
jax: 0.10.0
libtpu: 0.0.40
codegen_flags: <defaults>
</compile_context>

<pallas_src>
import numpy as np
import jax
import jax.numpy as jnp
from jax import lax
from jax.experimental import pallas as pl
from jax.experimental.pallas import tpu as pltpu

DELTA = 1e-6
SOFTPLUS_BETA = 5.0
SOFTPLUS_THRESH = 20.0       # torch.nn.Softplus default threshold
BN_EPS = 1e-5
SCALE_HM = 0.25              # scale_factor_heatmap
SCALE_COND = 0.125           # scale_factor_cond


def _softplus(x):
    """torch.nn.Softplus(beta=5) semantics (linear above threshold).
    NOTE: exp(5x) in the untaken branch may be inf for large x (never NaN), so
    the jnp.where select is safe for this forward-only kernel."""
    bx = SOFTPLUS_BETA * x
    return jnp.where(bx > SOFTPLUS_THRESH, x,
                     jnp.log(1.0 + jnp.exp(bx)) / SOFTPLUS_BETA)


def bicubic_matrix(in_size, out_size, scale_factor):
    """Dense (out, in) 1-D resize matrix replicating
    F.interpolate(mode='bicubic', align_corners=False, scale_factor=...)
    (cubic convolution kernel A=-0.75, clamped border indices).  Bicubic is
    separable, so a 2-D resize is W_h @ img @ W_w^T."""
    A = -0.75
    ratio = 1.0 / float(scale_factor)

    def cc1(x):  # |x| <= 1
        return ((A + 2.0) * x - (A + 3.0)) * x * x + 1.0

    def cc2(x):  # 1 < |x| < 2
        return ((A * x - 5.0 * A) * x + 8.0 * A) * x - 4.0 * A

    W = np.zeros((out_size, in_size), dtype=np.float64)
    for o in range(out_size):
        real = ratio * (o + 0.5) - 0.5
        i0 = int(np.floor(real))
        t = real - i0
        coeffs = (cc2(t + 1.0), cc1(t), cc1(1.0 - t), cc2(2.0 - t))
        for k, c in enumerate(coeffs):
            idx = min(max(i0 - 1 + k, 0), in_size - 1)
            W[o, idx] += c
    return W.astype(np.float32)


# ------------------------------- wrapper + kernel ------------------------------
def gaffa_forward(heatmaps, cond, bias_param, bn_gamma, bn_beta):
    B, L, H, W = heatmaps.shape
    assert H == W, "square heatmaps assumed (matches the module default)"
    Hh = int(H * SCALE_HM)
    Hc = int(H * SCALE_COND)
    K = Hh                       # prior kernel size == small heatmap size
    PAD = (K - 1) // 2           # conv_fft pads (PAD, PAD+1) on each spatial axis
    HW = H * W
    HhWh = Hh * Hh
    LHhWh = L * HhWh
    f32 = jnp.float32

    D_np = bicubic_matrix(H, Hh, SCALE_HM)                          # (Hh, H)
    U2 = jnp.asarray(bicubic_matrix(Hc, K, SCALE_HM / SCALE_COND))  # (K, Hc)
    U4_np = bicubic_matrix(Hh, H, 1.0 / SCALE_HM)                   # (H, Hh)

    # -------- parameter-only preprocessing (plain XLA, done once) -------------
    # prior_{i,j} = softplus(bicubic 2x upsample of the conditional heatmap)
    prior = _softplus(jnp.einsum('ah,ijhw,cw->ijac', U2, cond, U2))  # (L, L, K, K)

    # conv_fft == correlation of the zero-padded likelihood with the flipped
    # prior.  Expressed as a doubly-block-Toeplitz matrix, then embedded
    # block-diagonally over the conditioning landmark j so the grouped
    # convolution for ALL (i, j) pairs is a single MXU matmul in the kernel:
    #   conv[i,j][y,x] = sum_{u,v} prior[i,j][y-u+K-1-PAD, x-v+K-1-PAD] * lik[j][u,v]
    idx = np.arange(Hh)
    dyx = idx[:, None] - idx[None, :] + (K - 1 - PAD)               # (out, in)
    valid = (dyx >= 0) & (dyx < K)
    dcl = np.clip(dyx, 0, K - 1)
    conv_mat = prior[:, :, dcl[:, None, :, None], dcl[None, :, None, :]]
    mask = jnp.asarray((valid[:, None, :, None]
                        & valid[None, :, None, :]).astype(np.float32))
    conv_mat = (conv_mat * mask).reshape(L, L, HhWh, HhWh)       # [i, j, q=(y,x), p=(u,v)]
    blocks = jnp.transpose(conv_mat, (1, 3, 0, 2)).reshape(L, HhWh, LHhWh)   # [j, p, (i,q)]
    cmat_bd = jnp.einsum('jpn,jk->jpkn', blocks, jnp.eye(L, dtype=f32))
    cmat_bd = cmat_bd.reshape(L * HhWh, L * LHhWh)               # rows (j,p), cols (j,i,q)

    # softplus(bias) + delta flattened to lanes ordered (j, i, q)
    biasd = _softplus(bias_param) + DELTA                            # (L_i, L_j, Hh, Wh)
    biasd_flat = jnp.transpose(biasd.reshape(L, L, HhWh), (1, 0, 2)).reshape(1, L * LHhWh)

    # Separable bicubic resizes as single flat matmuls (Kronecker form)
    dnt = jnp.asarray(np.kron(D_np, D_np).T)                         # (H*W, Hh*Wh)
    upt = jnp.asarray(np.kron(U4_np, U4_np).T)                       # (Hh*Wh, H*W)

    # soft-argmax reduction matrix: columns [ones, row, col, 0...] padded to 128
    coord_np = np.zeros((HW, 128), np.float32)
    lane = np.arange(HW)
    coord_np[:, 0] = 1.0
    coord_np[:, 1] = (lane // W).astype(np.float32)
    coord_np[:, 2] = (lane % W).astype(np.float32)
    coord = jnp.asarray(coord_np)

    # BatchNorm2d (training mode = batch statistics), fused to per-row scale/shift
    mean = jnp.mean(heatmaps, axis=(0, 2, 3))
    var = jnp.var(heatmaps, axis=(0, 2, 3))
    scale_v = (bn_gamma / jnp.sqrt(var + BN_EPS)).astype(f32)
    shift_v = (bn_beta - mean * scale_v).astype(f32)
    scale_rows = jnp.repeat(scale_v, B).reshape(L * B, 1)            # row = i*B + b
    shift_rows = jnp.repeat(shift_v, B).reshape(L * B, 1)

    # rows = (landmark i, batch b) = i*B + b, lanes = flattened (H, W)
    hm_rows = jnp.transpose(heatmaps, (1, 0, 2, 3)).reshape(L * B, HW).astype(f32)

    def kernel(hm_ref, scale_ref, shift_ref, dnt_ref, cmat_ref, biasd_ref,
               upt_ref, coord_ref, out_ref):
        # BatchNorm (fused scale/shift) + init marginal energy, all rows at once.
        x = hm_ref[...] * scale_ref[...] + shift_ref[...]              # (L*B, HW)
        init = jnp.log(_softplus(x) + DELTA)

        # 0.25x bicubic downsample of every (landmark, batch) row: ONE matmul.
        lik = _softplus(jnp.dot(x, dnt_ref[...],
                                preferred_element_type=jnp.float32))   # (L*B, HhWh)

        # Fold conditioning-landmark rows into lanes: (B, L*HhWh), lanes (j, p).
        lik_flat = jnp.concatenate(
            [lik[j * B:(j + 1) * B, :] for j in range(L)], axis=1)

        # Grouped "conv_fft" for all (i, j) pairs: ONE block-diagonal matmul,
        # output lanes ordered (j, i, q).  One full-tile log (EUP) afterwards.
        conv = jnp.dot(lik_flat, cmat_ref[...],
                       preferred_element_type=jnp.float32)             # (B, L*L*HhWh)
        logt = jnp.log(conv + biasd_ref[...])

        # Sum over conditioning landmark j: L-1 aligned lane-block adds.
        energy = logt[:, 0:LHhWh]
        for j in range(1, L):
            energy = energy + logt[:, j * LHhWh:(j + 1) * LHhWh]       # (B, L*HhWh)

        # Back to rows = (i, b) for the per-landmark upsample / soft-argmax.
        energy_rows = jnp.concatenate(
            [energy[:, i * HhWh:(i + 1) * HhWh] for i in range(L)], axis=0)  # (L*B, HhWh)

        # 4x bicubic upsample (ONE matmul) + init energy.
        me = jnp.dot(energy_rows, upt_ref[...],
                     preferred_element_type=jnp.float32) + init        # (L*B, HW)

        # Temperature-1 soft-argmax, vectorized over all L*B rows.  The three
        # weighted reductions (Z, sum p*row, sum p*col) are ONE matmul.
        m = jnp.max(me, axis=1, keepdims=True)
        p = jnp.exp(me - m)
        sums = jnp.dot(p, coord_ref[...],
                       preferred_element_type=jnp.float32)             # (L*B, 128)
        z = sums[:, 0:1]
        inv = pl.reciprocal(z, approx=True)
        inv = inv * (2.0 - z * inv)          # one Newton step -> full f32 accuracy
        out_ref[...] = sums * inv            # single lane-dense (8,128) store

    out = pl.pallas_call(
        kernel,
        out_shape=jax.ShapeDtypeStruct((L * B, 128), f32),
        grid=(1,),                            # whole batch folded into rows: one step
        in_specs=[
            pl.BlockSpec((L * B, HW), lambda g: (0, 0)),              # heatmaps (rows=(i,b))
            pl.BlockSpec((L * B, 1), lambda g: (0, 0)),               # BN scale
            pl.BlockSpec((L * B, 1), lambda g: (0, 0)),               # BN shift
            pl.BlockSpec((HW, HhWh), lambda g: (0, 0)),               # kron(D, D)^T
            pl.BlockSpec((L * HhWh, L * LHhWh), lambda g: (0, 0)),    # block-diag conv matrix
            pl.BlockSpec((1, L * LHhWh), lambda g: (0, 0)),           # softplus(bias)+delta
            pl.BlockSpec((HhWh, HW), lambda g: (0, 0)),               # kron(U4, U4)^T
            pl.BlockSpec((HW, 128), lambda g: (0, 0)),                # [ones,row,col,0..]
        ],
        out_specs=pl.BlockSpec((L * B, 128), lambda g: (0, 0)),
        compiler_params=pltpu.CompilerParams(
            dimension_semantics=("arbitrary",)),
    )(hm_rows, scale_rows, shift_rows, dnt, cmat_bd, biasd_flat, upt, coord)

    out = out.reshape(L, B, 128)
    ex = out[:, :, 1].T           # expected row index (torch "expected_x")
    ey = out[:, :, 2].T           # expected col index (torch "expected_y")
    ones = jnp.ones((B, L), f32)
    return jnp.stack([ones, ex, ey], axis=-1)    # (B, L, 3)


# --------------------------- pure-JAX reference --------------------------------
def gaffa_reference(heatmaps, cond, bias_param, bn_gamma, bn_beta):
    B, L, H, W = heatmaps.shape
    Hh = int(H * SCALE_HM)
    Hc = int(H * SCALE_COND)
    K = Hh
    PAD = (K - 1) // 2
    D = jnp.asarray(bicubic_matrix(H, Hh, SCALE_HM))
    U2 = jnp.asarray(bicubic_matrix(Hc, K, SCALE_HM / SCALE_COND))
    U4 = jnp.asarray(bicubic_matrix(Hh, H, 1.0 / SCALE_HM))

    mean = jnp.mean(heatmaps, axis=(0, 2, 3))
    var = jnp.var(heatmaps, axis=(0, 2, 3))
    hmn = (heatmaps - mean[None, :, None, None]) / jnp.sqrt(var + BN_EPS)[None, :, None, None]
    hmn = hmn * bn_gamma[None, :, None, None] + bn_beta[None, :, None, None]
    resized = jnp.einsum('ah,blhw,cw->blac', D, hmn, D)

    rows = jnp.arange(H, dtype=jnp.float32)[:, None]
    cols = jnp.arange(W, dtype=jnp.float32)[None, :]
    coords = []
    for i in range(L):
        prior = _softplus(jnp.einsum('ah,jhw,cw->jac', U2, cond[i], U2))   # (L, K, K)
        lik = _softplus(resized)                                            # (B, L, K, K)
        bpad = jnp.pad(lik, ((0, 0), (0, 0), (PAD, PAD + 1), (PAD, PAD + 1)))
        kern = prior[:, None, ::-1, ::-1]                                   # flipped -> true conv
        conv = lax.conv_general_dilated(
            bpad, kern, window_strides=(1, 1), padding='VALID',
            dimension_numbers=('NCHW', 'OIHW', 'NCHW'), feature_group_count=L)
        energy = jnp.sum(jnp.log(conv + _softplus(bias_param[i])[None] + DELTA), axis=1)
        me = jnp.einsum('ah,bhw,cw->bac', U4, energy, U4)
        me = me + jnp.log(_softplus(hmn[:, i]) + DELTA)
        p = jax.nn.softmax(me.reshape(B, -1), axis=1).reshape(B, H, W)
        ex = jnp.sum(p * rows[None], axis=(1, 2))
        ey = jnp.sum(p * cols[None], axis=(1, 2))
        coords.append(jnp.stack([jnp.ones((B,), jnp.float32), ex, ey], axis=1))
    return jnp.stack(coords, axis=1)


if __name__ == "__main__":
    key = jax.random.PRNGKey(0)
    B, L, H, W = 2, 4, 32, 32
    Hh = int(H * SCALE_HM)
    Hc = int(H * SCALE_COND)

    k1, k2 = jax.random.split(key)
    heatmaps = jax.random.normal(k1, (B, L, H, W), jnp.float32)
    # TODO(synk): heatmap_dict / conditional heatmaps come from data files in the
    # original module; synthesized here with full connectivity (every landmark is
    # conditioned on all L landmarks) and random conditional heatmaps.
    cond = jax.random.normal(k2, (L, L, Hc, Hc), jnp.float32)
    # bias parameters are initialised to zeros + delta in the module __init__
    bias_param = jnp.full((L, L, Hh, Hh), DELTA, jnp.float32)
    # BatchNorm2d default affine init
    bn_gamma = jnp.ones((L,), jnp.float32)
    bn_beta = jnp.zeros((L,), jnp.float32)

    out = jax.block_until_ready(
        gaffa_forward(heatmaps, cond, bias_param, bn_gamma, bn_beta))
    ref = jax.block_until_ready(
        gaffa_reference(heatmaps, cond, bias_param, bn_gamma, bn_beta))

    assert out.shape == (B, L, 3)
    np.testing.assert_allclose(np.asarray(out), np.asarray(ref),
                               rtol=1e-3, atol=1e-2)
    print("KERNEL_OK")
</pallas_src>

<mosaic_0001>
module attributes {stable_mosaic.version = 11 : i64} {
  func.func @kernel(%arg0: i32, %arg1: memref<8x1024xf32, #tpu.memory_space<vmem>>, %arg2: memref<8x1xf32, #tpu.memory_space<vmem>>, %arg3: memref<8x1xf32, #tpu.memory_space<vmem>>, %arg4: memref<1024x64xf32, #tpu.memory_space<vmem>>, %arg5: memref<256x1024xf32, #tpu.memory_space<vmem>>, %arg6: memref<1x1024xf32, #tpu.memory_space<vmem>>, %arg7: memref<64x1024xf32, #tpu.memory_space<vmem>>, %arg8: memref<1024x128xf32, #tpu.memory_space<vmem>>, %arg9: memref<8x128xf32, #tpu.memory_space<vmem>>) attributes {dimension_semantics = [#tpu.dimension_semantics<arbitrary>], iteration_bounds = array<i64: 1>, scalar_prefetch = 0 : i64, scratch_operands = 0 : i64, tpu.core_type = #tpu.core_type<tc>, window_params = [{pipeline_mode = #tpu.pipeline_mode<synchronous>, transform_indices = @transform_0, window_bounds = array<i64: 8, 1024>}, {pipeline_mode = #tpu.pipeline_mode<synchronous>, transform_indices = @transform_1, window_bounds = array<i64: 8, 1>}, {pipeline_mode = #tpu.pipeline_mode<synchronous>, transform_indices = @transform_2, window_bounds = array<i64: 8, 1>}, {pipeline_mode = #tpu.pipeline_mode<synchronous>, transform_indices = @transform_3, window_bounds = array<i64: 1024, 64>}, {pipeline_mode = #tpu.pipeline_mode<synchronous>, transform_indices = @transform_4, window_bounds = array<i64: 256, 1024>}, {pipeline_mode = #tpu.pipeline_mode<synchronous>, transform_indices = @transform_5, window_bounds = array<i64: 1, 1024>}, {pipeline_mode = #tpu.pipeline_mode<synchronous>, transform_indices = @transform_6, window_bounds = array<i64: 64, 1024>}, {pipeline_mode = #tpu.pipeline_mode<synchronous>, transform_indices = @transform_7, window_bounds = array<i64: 1024, 128>}, {pipeline_mode = #tpu.pipeline_mode<synchronous>, transform_indices = @transform_8, window_bounds = array<i64: 8, 128>}]} {
    %c0 = arith.constant 0 : index
    %c0_0 = arith.constant 0 : index
    %0 = vector.load %arg1[%c0, %c0_0] : memref<8x1024xf32, #tpu.memory_space<vmem>>, vector<8x1024xf32>
    %c0_1 = arith.constant 0 : index
    %c0_2 = arith.constant 0 : index
    %1 = vector.load %arg2[%c0_1, %c0_2] : memref<8x1xf32, #tpu.memory_space<vmem>>, vector<8x1xf32>
    %2 = vector.broadcast %1 : vector<8x1xf32> to vector<8x1024xf32>
    %3 = arith.mulf %0, %2 : vector<8x1024xf32>
    %c0_3 = arith.constant 0 : index
    %c0_4 = arith.constant 0 : index
    %4 = vector.load %arg3[%c0_3, %c0_4] : memref<8x1xf32, #tpu.memory_space<vmem>>, vector<8x1xf32>
    %5 = vector.broadcast %4 : vector<8x1xf32> to vector<8x1024xf32>
    %6 = arith.addf %3, %5 : vector<8x1024xf32>
    %cst = arith.constant 5.000000e+00 : f32
    %7 = vector.broadcast %cst : f32 to vector<8x1024xf32>
    %8 = arith.mulf %7, %6 : vector<8x1024xf32>
    %cst_5 = arith.constant 2.000000e+01 : f32
    %9 = vector.broadcast %cst_5 : f32 to vector<8x1024xf32>
    %10 = arith.cmpf ogt, %8, %9 : vector<8x1024xf32>
    %11 = math.exp %8 : vector<8x1024xf32>
    %cst_6 = arith.constant 1.000000e+00 : f32
    %12 = vector.broadcast %cst_6 : f32 to vector<8x1024xf32>
    %13 = arith.addf %12, %11 : vector<8x1024xf32>
    %14 = math.log %13 : vector<8x1024xf32>
    %cst_7 = arith.constant 5.000000e+00 : f32
    %15 = vector.broadcast %cst_7 : f32 to vector<8x1024xf32>
    %16 = arith.divf %14, %15 : vector<8x1024xf32>
    %17 = arith.select %10, %6, %16 : vector<8x1024xi1>, vector<8x1024xf32>
    %cst_8 = arith.constant 9.99999997E-7 : f32
    %18 = vector.broadcast %cst_8 : f32 to vector<8x1024xf32>
    %19 = arith.addf %17, %18 : vector<8x1024xf32>
    %20 = math.log %19 : vector<8x1024xf32>
    %c0_9 = arith.constant 0 : index
    %c0_10 = arith.constant 0 : index
    %21 = vector.load %arg4[%c0_9, %c0_10] : memref<1024x64xf32, #tpu.memory_space<vmem>>, vector<1024x64xf32>
    %cst_11 = arith.constant dense<0.000000e+00> : vector<8x64xf32>
    %22 = tpu.matmul %6, %21, %cst_11 {dimension_numbers = #tpu.dot_dimension_numbers<[1], [0], [0], [1], [0, 0, 1, 1], [], []>} : vector<8x1024xf32>, vector<1024x64xf32>, vector<8x64xf32> -> vector<8x64xf32>
    %cst_12 = arith.constant 5.000000e+00 : f32
    %23 = vector.broadcast %cst_12 : f32 to vector<8x64xf32>
    %24 = arith.mulf %23, %22 : vector<8x64xf32>
    %cst_13 = arith.constant 2.000000e+01 : f32
    %25 = vector.broadcast %cst_13 : f32 to vector<8x64xf32>
    %26 = arith.cmpf ogt, %24, %25 : vector<8x64xf32>
    %27 = math.exp %24 : vector<8x64xf32>
    %cst_14 = arith.constant 1.000000e+00 : f32
    %28 = vector.broadcast %cst_14 : f32 to vector<8x64xf32>
    %29 = arith.addf %28, %27 : vector<8x64xf32>
    %30 = math.log %29 : vector<8x64xf32>
    %cst_15 = arith.constant 5.000000e+00 : f32
    %31 = vector.broadcast %cst_15 : f32 to vector<8x64xf32>
    %32 = arith.divf %30, %31 : vector<8x64xf32>
    %33 = arith.select %26, %22, %32 : vector<8x64xi1>, vector<8x64xf32>
    %34 = vector.extract_strided_slice %33 {offsets = [0, 0], sizes = [2, 64], strides = [1, 1]} : vector<8x64xf32> to vector<2x64xf32>
    %35 = vector.extract_strided_slice %33 {offsets = [2, 0], sizes = [2, 64], strides = [1, 1]} : vector<8x64xf32> to vector<2x64xf32>
    %36 = vector.extract_strided_slice %33 {offsets = [4, 0], sizes = [2, 64], strides = [1, 1]} : vector<8x64xf32> to vector<2x64xf32>
    %37 = vector.extract_strided_slice %33 {offsets = [6, 0], sizes = [2, 64], strides = [1, 1]} : vector<8x64xf32> to vector<2x64xf32>
    %38 = tpu.concatenate %34, %35, %36, %37 in 1 : vector<2x64xf32>, vector<2x64xf32>, vector<2x64xf32>, vector<2x64xf32> -> vector<2x256xf32>
    %c0_16 = arith.constant 0 : index
    %c0_17 = arith.constant 0 : index
    %39 = vector.load %arg5[%c0_16, %c0_17] : memref<256x1024xf32, #tpu.memory_space<vmem>>, vector<256x1024xf32>
    %cst_18 = arith.constant dense<0.000000e+00> : vector<2x1024xf32>
    %40 = tpu.matmul %38, %39, %cst_18 {dimension_numbers = #tpu.dot_dimension_numbers<[1], [0], [0], [1], [0, 0, 1, 1], [], []>} : vector<2x256xf32>, vector<256x1024xf32>, vector<2x1024xf32> -> vector<2x1024xf32>
    %c0_19 = arith.constant 0 : index
    %c0_20 = arith.constant 0 : index
    %41 = vector.load %arg6[%c0_19, %c0_20] : memref<1x1024xf32, #tpu.memory_space<vmem>>, vector<1x1024xf32>
    %42 = vector.broadcast %41 : vector<1x1024xf32> to vector<2x1024xf32>
    %43 = arith.addf %40, %42 : vector<2x1024xf32>
    %44 = math.log %43 : vector<2x1024xf32>
    %45 = vector.extract_strided_slice %44 {offsets = [0, 0], sizes = [2, 256], strides = [1, 1]} : vector<2x1024xf32> to vector<2x256xf32>
    %46 = vector.extract_strided_slice %44 {offsets = [0, 256], sizes = [2, 256], strides = [1, 1]} : vector<2x1024xf32> to vector<2x256xf32>
    %47 = arith.addf %45, %46 : vector<2x256xf32>
    %48 = vector.extract_strided_slice %44 {offsets = [0, 512], sizes = [2, 256], strides = [1, 1]} : vector<2x1024xf32> to vector<2x256xf32>
    %49 = arith.addf %47, %48 : vector<2x256xf32>
    %50 = vector.extract_strided_slice %44 {offsets = [0, 768], sizes = [2, 256], strides = [1, 1]} : vector<2x1024xf32> to vector<2x256xf32>
    %51 = arith.addf %49, %50 : vector<2x256xf32>
    %52 = vector.extract_strided_slice %51 {offsets = [0, 0], sizes = [2, 64], strides = [1, 1]} : vector<2x256xf32> to vector<2x64xf32>
    %53 = vector.extract_strided_slice %51 {offsets = [0, 64], sizes = [2, 64], strides = [1, 1]} : vector<2x256xf32> to vector<2x64xf32>
    %54 = vector.extract_strided_slice %51 {offsets = [0, 128], sizes = [2, 64], strides = [1, 1]} : vector<2x256xf32> to vector<2x64xf32>
    %55 = vector.extract_strided_slice %51 {offsets = [0, 192], sizes = [2, 64], strides = [1, 1]} : vector<2x256xf32> to vector<2x64xf32>
    %56 = tpu.concatenate %52, %53, %54, %55 in 0 : vector<2x64xf32>, vector<2x64xf32>, vector<2x64xf32>, vector<2x64xf32> -> vector<8x64xf32>
    %c0_21 = arith.constant 0 : index
    %c0_22 = arith.constant 0 : index
    %57 = vector.load %arg7[%c0_21, %c0_22] : memref<64x1024xf32, #tpu.memory_space<vmem>>, vector<64x1024xf32>
    %cst_23 = arith.constant dense<0.000000e+00> : vector<8x1024xf32>
    %58 = tpu.matmul %56, %57, %cst_23 {dimension_numbers = #tpu.dot_dimension_numbers<[1], [0], [0], [1], [0, 0, 1, 1], [], []>} : vector<8x64xf32>, vector<64x1024xf32>, vector<8x1024xf32> -> vector<8x1024xf32>
    %59 = arith.addf %58, %20 : vector<8x1024xf32>
    %cst_24 = arith.constant dense<0xFF800000> : vector<8xf32>
    %60 = vector.multi_reduction <maximumf>, %59, %cst_24 [1] : vector<8x1024xf32> to vector<8xf32>
    %61 = vector.shape_cast %60 : vector<8xf32> to vector<8x1xf32>
    %62 = vector.broadcast %61 : vector<8x1xf32> to vector<8x1024xf32>
    %63 = arith.subf %59, %62 : vector<8x1024xf32>
    %64 = math.exp %63 : vector<8x1024xf32>
    %c0_25 = arith.constant 0 : index
    %c0_26 = arith.constant 0 : index
    %65 = vector.load %arg8[%c0_25, %c0_26] : memref<1024x128xf32, #tpu.memory_space<vmem>>, vector<1024x128xf32>
    %cst_27 = arith.constant dense<0.000000e+00> : vector<8x128xf32>
    %66 = tpu.matmul %64, %65, %cst_27 {dimension_numbers = #tpu.dot_dimension_numbers<[1], [0], [0], [1], [0, 0, 1, 1], [], []>} : vector<8x1024xf32>, vector<1024x128xf32>, vector<8x128xf32> -> vector<8x128xf32>
    %67 = vector.extract_strided_slice %66 {offsets = [0, 0], sizes = [8, 1], strides = [1, 1]} : vector<8x128xf32> to vector<8x1xf32>
    %68 = tpu.reciprocal %67 {approx = true} : vector<8x1xf32> -> vector<8x1xf32>
    %69 = arith.mulf %67, %68 : vector<8x1xf32>
    %cst_28 = arith.constant 2.000000e+00 : f32
    %70 = vector.broadcast %cst_28 : f32 to vector<8x1xf32>
    %71 = arith.subf %70, %69 : vector<8x1xf32>
    %72 = arith.mulf %68, %71 : vector<8x1xf32>
    %73 = vector.broadcast %72 : vector<8x1xf32> to vector<8x128xf32>
    %74 = arith.mulf %66, %73 : vector<8x128xf32>
    %c0_29 = arith.constant 0 : index
    %c0_30 = arith.constant 0 : index
    %75 = vector.load %arg9[%c0_29, %c0_30] : memref<8x128xf32, #tpu.memory_space<vmem>>, vector<8x128xf32>
    tpu.vector_store %arg9[%c0_29, %c0_30], %74 {strides = array<i32>} : memref<8x128xf32, #tpu.memory_space<vmem>>, vector<8x128xf32>,
    return
  }
  func.func @transform_0(%arg0: i32) -> (i32, i32) {
    %c0_i32 = arith.constant 0 : i32
    %c0_i32_0 = arith.constant 0 : i32
    %c0_i32_1 = arith.constant 0 : i32
    return %c0_i32, %c0_i32_0 : i32, i32
  }
  func.func @transform_1(%arg0: i32) -> (i32, i32) {
    %c0_i32 = arith.constant 0 : i32
    %c0_i32_0 = arith.constant 0 : i32
    %c0_i32_1 = arith.constant 0 : i32
    return %c0_i32, %c0_i32_0 : i32, i32
  }
  func.func @transform_2(%arg0: i32) -> (i32, i32) {
    %c0_i32 = arith.constant 0 : i32
    %c0_i32_0 = arith.constant 0 : i32
    %c0_i32_1 = arith.constant 0 : i32
    return %c0_i32, %c0_i32_0 : i32, i32
  }
  func.func @transform_3(%arg0: i32) -> (i32, i32) {
    %c0_i32 = arith.constant 0 : i32
    %c0_i32_0 = arith.constant 0 : i32
    %c0_i32_1 = arith.constant 0 : i32
    return %c0_i32, %c0_i32_0 : i32, i32
  }
  func.func @transform_4(%arg0: i32) -> (i32, i32) {
    %c0_i32 = arith.constant 0 : i32
    %c0_i32_0 = arith.constant 0 : i32
    %c0_i32_1 = arith.constant 0 : i32
    return %c0_i32, %c0_i32_0 : i32, i32
  }
  func.func @transform_5(%arg0: i32) -> (i32, i32) {
    %c0_i32 = arith.constant 0 : i32
    %c0_i32_0 = arith.constant 0 : i32
    %c0_i32_1 = arith.constant 0 : i32
    return %c0_i32, %c0_i32_0 : i32, i32
  }
  func.func @transform_6(%arg0: i32) -> (i32, i32) {
    %c0_i32 = arith.constant 0 : i32
    %c0_i32_0 = arith.constant 0 : i32
    %c0_i32_1 = arith.constant 0 : i32
    return %c0_i32, %c0_i32_0 : i32, i32
  }
  func.func @transform_7(%arg0: i32) -> (i32, i32) {
    %c0_i32 = arith.constant 0 : i32
    %c0_i32_0 = arith.constant 0 : i32
    %c0_i32_1 = arith.constant 0 : i32
    return %c0_i32, %c0_i32_0 : i32, i32
  }
  func.func @transform_8(%arg0: i32) -> (i32, i32) {
    %c0_i32 = arith.constant 0 : i32
    %c0_i32_0 = arith.constant 0 : i32
    %c0_i32_1 = arith.constant 0 : i32
    return %c0_i32, %c0_i32_0 : i32, i32
  }
}

</mosaic_0001>

<bundles_post_ra>
// kernel: tpu_custom_call.1
= control target key start
LH: loop header
LB: loop body
LE: loop exit
PB: predicated region body
PF: predicated region fallthrough
CT: control target
= control target key end

     0   :  { %13 = vsyncpa [#allocation3], 0  ;;  %s4310_s0 = inlined_call_operand.hbm [shape: f32[8,1024], index: 0, kind: input, shape index: {}]   ;;  %s4311_s1 = inlined_call_operand.vmem [shape: f32[8,1], index: 1, kind: input, shape index: {}]   ;;  %s4312_s2 = inlined_call_operand.vmem [shape: f32[8,1], index: 2, kind: input, shape index: {}]   ;;  %s4313_s3 = inlined_call_operand.vmem [shape: f32[1024,64], index: 3, kind: input, shape index: {}]   ;;  %s4314_s4 = inlined_call_operand.hbm [shape: f32[256,1024], index: 4, kind: input, shape index: {}]   ;;  %s4315_s5 = inlined_call_operand.vmem [shape: f32[1,1024], index: 5, kind: input, shape index: {}]   ;;  %s4316_s6 = inlined_call_operand.vmem [shape: f32[64,1024], index: 6, kind: input, shape index: {}]   ;;  %s4317_s7 = inlined_call_operand.vmem [shape: f32[1024,128], index: 7, kind: input, shape index: {}]   ;;  %s4318_s8 = inlined_call_operand.hbm [shape: f32[8,128], index: 8, kind: output, shape index: {}]  }
   0x1   :  { %14 = vsyncpa [#allocation6], 0 }
   0x2   :  { %15 = vsyncpa [#allocation4], 0  ;;  %s3092_s27 = smov [#allocation2]   ;;  %s3093_s29 = smov [#allocation5]  }
   0x3   :  { %s22_s28 = sshll.u32 %s3092_s27, 4  ;;  %s37_s30 = sshll.u32 %s3093_s29, 4  ;;  %s23_s28 = int_to_ptr.vmem [resolvable:$true] %s22_s28  ;;  %s3144_s30 = int_to_ptr.vmem [resolvable:$true] %s37_s30 }
   0x4   :  { %s3020_s11 = scalar_lea.hbm %s4310_s0, 1024 }
   0x5   :  { %p3021_p0 = scmp.ne.s32.totalorder %s4310_s0, %s3020_s11  ;;  %p3024_p1 = scmp.lt.u32.totalorder %s3020_s11, %s4310_s0 }
   0x7   :  { %p3026_p2 = pnand %p3024_p1, %p3021_p0 }
   0x9   :  { %3029 = shalt.err (!%p3026_p2)
}
   0xa   :  { %s3030_s16 = scalar_lea.vmem %s23_s28, 1024  ;;  %p3035_p4 = scmp.lt.s32.totalorder %s23_s28, %s23_s28 }
   0xb   :  { %p3031_p3 = scmp.ne.s32.totalorder %s23_s28, %s3030_s16  ;;  %p3036_p5 = scmp.lt.s32.totalorder %s3030_s16, %s3030_s16 }
   0xd   :  { %p3037_p6 = por %p3036_p5, %p3035_p4 }
   0xf   :  { %p3038_p7 = pnand %p3037_p6, %p3031_p3 }
  0x11   :  { %3041 = shalt.err (!%p3038_p7)
}
  0x12   :  { %25 = dma.hbm_to_vmem [thread:$0]  %s4310_s0, 1024, %s23_s28, [#allocation3]  }
  0x13   :  { %s3042_s21 = scalar_lea.hbm %s4314_s4, 32768 }
  0x14   :  { %p3043_p8 = scmp.ne.s32.totalorder %s4314_s4, %s3042_s21  ;;  %p3046_p9 = scmp.lt.u32.totalorder %s3042_s21, %s4314_s4 }
  0x16   :  { %p3048_p10 = pnand %p3046_p9, %p3043_p8 }
  0x18   :  { %3051 = shalt.err (!%p3048_p10)
}
  0x19   :  { %s3052_s26 = scalar_lea.vmem %s3144_s30, 32768  ;;  %p3057_p12 = scmp.lt.s32.totalorder %s3144_s30, %s3144_s30 }
  0x1a   :  { %p3053_p11 = scmp.ne.s32.totalorder %s3144_s30, %s3052_s26  ;;  %p3058_p13 = scmp.lt.s32.totalorder %s3052_s26, %s3052_s26 }
  0x1c   :  { %p3059_p0 = por %p3058_p13, %p3057_p12 }
  0x1e   :  { %p3060_p1 = pnand %p3059_p0, %p3053_p11 }
  0x20   :  { %3063 = shalt.err (!%p3060_p1)
}
  0x21   :  { %s3094_s0 = smov 1024   ;;  %s3095_s27 = smov 64  }
  0x22   :  { %43 = dma.hbm_to_vmem [thread:$0]  %s4314_s4, 32768, %s3144_s30, [#allocation6], %s3094_s0, %s3094_s0, %s3095_s27  }
  0x23   :  { %3086 = dma.done.wait [#allocation3], 1024  }
  0x24   :  { %3087 = vsyncadd [#allocation3], 4294966272 }
  0x25   :  { %3088 = dma.done.wait [#allocation6], 32768  }
  0x26   :  { %3089 = vsyncadd [#allocation6], 4294934528  ;;  %v3096_v0 = vmov 0   ;;  %v64_v1 = vld [vmem:[%s4311_s1] sm:$0xff]  ;;  %v206_v4 = vld [vmem:[%s4313_s3 + $0x88] sm:$0xff]  ;;  %vm617_vm1 = vcmask 523264  }
  0x27   :  { %2928 = vset.pattern.permute.xlu0 %v3096_v0  ;;  %v78_v2 = vld [vmem:[%s4312_s2] sm:$0xff]  ;;  %v238_v6 = vld [vmem:[%s4313_s3 + $0x188] sm:$0xff]  ;;  %v207_v14 = vld [vmem:[%s4313_s3 + $0x90] sm:$0xff]  ;;  %vm1236_vm2 = vcmask 1041408   ;;  %vm1238_vm3 = vcmask 1043456   ;;  %vm1240_vm4 = vcmask 1045504  }
  0x28   :  { %v205_v3 = vld [vmem:[%s4313_s3 + $0x80] sm:$0xff]  ;;  %67 = vperm.xlu0 %2928, %v64_v1   ;;  %v190_v10 = vld [vmem:[%s4313_s3 + $0x8] sm:$0xff]  ;;  %v208_v15 = vld [vmem:[%s4313_s3 + $0x98] sm:$0xff] }
  0x29   :  { %v237_v5 = vld [vmem:[%s4313_s3 + $0x180] sm:$0xff]  ;;  %v2345_v7 = vpack.c.bf16 %v206_v4, %v205_v3  ;;  %v222_v13 = vld [vmem:[%s4313_s3 + $0x108] sm:$0xff]  ;;  %v2349_v17 = vpack.c.bf16 %v208_v15, %v207_v14  ;;  %v239_v18 = vld [vmem:[%s4313_s3 + $0x190] sm:$0xff] }
  0x2a   :  { %v2377_v8 = vpack.c.bf16 %v238_v6, %v237_v5  ;;  %v189_v9 = vld [vmem:[%s4313_s3] sm:$0xff]  ;;  %v240_v19 = vld [vmem:[%s4313_s3 + $0x198] sm:$0xff]  ;;  %v191_v20 = vld [vmem:[%s4313_s3 + $0x10] sm:$0xff] }
  0x2b   :  { %v221_v11 = vld [vmem:[%s4313_s3 + $0x100] sm:$0xff]  ;;  %v2347_v12 = vpack.c.bf16 %v190_v10, %v189_v9  ;;  %2346 = vmatprep.subr.bf16.mxu0 %v2345_v7  ;;  %v2381_v21 = vpack.c.bf16 %v240_v19, %v239_v18  ;;  %v192_v22 = vld [vmem:[%s4313_s3 + $0x18] sm:$0xff]  ;;  %v223_v23 = vld [vmem:[%s4313_s3 + $0x110] sm:$0xff] }
  0x2c   :  { %2378 = vmatprep.subr.bf16.mxu1 %v2377_v8  ;;  %v2379_v16 = vpack.c.bf16 %v222_v13, %v221_v11  ;;  %81 = vperm.xlu0 %2928, %v78_v2   ;;  %v224_v24 = vld [vmem:[%s4313_s3 + $0x118] sm:$0xff]  ;;  %v2351_v25 = vpack.c.bf16 %v192_v22, %v191_v20  ;;  %v209_v27 = vld [vmem:[%s4313_s3 + $0xa0] sm:$0xff]  ;;  %v210_v28 = vld [vmem:[%s4313_s3 + $0xa8] sm:$0xff] }
  0x2d   :  { %2348 = vmatpush3.bf16.msra.mxu0 %v2347_v12  ;;  %v2383_v26 = vpack.c.bf16 %v224_v24, %v223_v23  ;;  %v241_v29 = vld [vmem:[%s4313_s3 + $0x1a0] sm:$0xff]  ;;  %v2353_v30 = vpack.c.bf16 %v210_v28, %v209_v27  ;;  %v242_v31 = vld [vmem:[%s4313_s3 + $0x1a8] sm:$0xff]  ;;  %v211_v37 = vld [vmem:[%s4313_s3 + $0xb0] sm:$0xff] }
  0x2e   :  { %2380 = vmatpush3.bf16.msra.mxu1 %v2379_v16  ;;  %2350 = vmatprep.subr.bf16.mxu0 %v2349_v17  ;;  %v193_v32 = vld [vmem:[%s4313_s3 + $0x20] sm:$0xff]  ;;  %v194_v33 = vld [vmem:[%s4313_s3 + $0x28] sm:$0xff]  ;;  %v2385_v34 = vpack.c.bf16 %v242_v31, %v241_v29  ;;  %v212_v39 = vld [vmem:[%s4313_s3 + $0xb8] sm:$0xff] }
  0x2f   :  { %2382 = vmatprep.subr.bf16.mxu1 %v2381_v21  ;;  %v225_v35 = vld [vmem:[%s4313_s3 + $0x120] sm:$0xff]  ;;  %v226_v36 = vld [vmem:[%s4313_s3 + $0x128] sm:$0xff]  ;;  %v2355_v38 = vpack.c.bf16 %v194_v33, %v193_v32  ;;  %v243_v40 = vld [vmem:[%s4313_s3 + $0x1b0] sm:$0xff]  ;;  %v2357_v43 = vpack.c.bf16 %v212_v39, %v211_v37 }
  0x30   :  { %v244_v41 = vld [vmem:[%s4313_s3 + $0x1b8] sm:$0xff]  ;;  %v2387_v42 = vpack.c.bf16 %v226_v36, %v225_v35  ;;  %v195_v44 = vld [vmem:[%s4313_s3 + $0x30] sm:$0xff]  ;;  %v213_v49 = vld [vmem:[%s4313_s3 + $0xc0] sm:$0xff] }
  0x31   :  { %2352 = vmatpush3.bf16.msra.mxu0 %v2351_v25  ;;  %v196_v45 = vld [vmem:[%s4313_s3 + $0x38] sm:$0xff]  ;;  %v227_v46 = vld [vmem:[%s4313_s3 + $0x130] sm:$0xff]  ;;  %v2389_v47 = vpack.c.bf16 %v244_v41, %v243_v40  ;;  %v214_v50 = vld [vmem:[%s4313_s3 + $0xc8] sm:$0xff] }
  0x32   :  { %2384 = vmatpush3.bf16.msra.mxu1 %v2383_v26  ;;  %2354 = vmatprep.subr.bf16.mxu0 %v2353_v30  ;;  %v228_v48 = vld [vmem:[%s4313_s3 + $0x138] sm:$0xff]  ;;  %v245_v51 = vld [vmem:[%s4313_s3 + $0x1c0] sm:$0xff]  ;;  %v246_v52 = vld [vmem:[%s4313_s3 + $0x1c8] sm:$0xff]  ;;  %v2359_v53 = vpack.c.bf16 %v196_v45, %v195_v44  ;;  %v2361_v55 = vpack.c.bf16 %v214_v50, %v213_v49 }
  0x33   :  { %2386 = vmatprep.subr.bf16.mxu1 %v2385_v34  ;;  %v2391_v54 = vpack.c.bf16 %v228_v48, %v227_v46  ;;  %v197_v56 = vld [vmem:[%s4313_s3 + $0x40] sm:$0xff]  ;;  %v198_v57 = vld [vmem:[%s4313_s3 + $0x48] sm:$0xff]  ;;  %v2393_v59 = vpack.c.bf16 %v246_v52, %v245_v51  ;;  %v215_v61 = vld [vmem:[%s4313_s3 + $0xd0] sm:$0xff] }
  0x34   :  { %v229_v58 = vld [vmem:[%s4313_s3 + $0x140] sm:$0xff]  ;;  %v230_v60 = vld [vmem:[%s4313_s3 + $0x148] sm:$0xff]  ;;  %v216_v62 = vld [vmem:[%s4313_s3 + $0xd8] sm:$0xff]  ;;  %v2363_v1 = vpack.c.bf16 %v198_v57, %v197_v56 }
  0x35   :  { %2356 = vmatpush3.bf16.msra.mxu0 %v2355_v38  ;;  %v247_v63 = vld [vmem:[%s4313_s3 + $0x1d0] sm:$0xff]  ;;  %v248_v0 = vld [vmem:[%s4313_s3 + $0x1d8] sm:$0xff]  ;;  %v2395_v2 = vpack.c.bf16 %v230_v60, %v229_v58  ;;  %v2365_v3 = vpack.c.bf16 %v216_v62, %v215_v61  ;;  %v217_v9 = vld [vmem:[%s4313_s3 + $0xe0] sm:$0xff] }
  0x36   :  { %2388 = vmatpush3.bf16.msra.mxu1 %v2387_v42  ;;  %2358 = vmatprep.subr.bf16.mxu0 %v2357_v43  ;;  %v199_v4 = vld [vmem:[%s4313_s3 + $0x50] sm:$0xff]  ;;  %v200_v5 = vld [vmem:[%s4313_s3 + $0x58] sm:$0xff]  ;;  %v2397_v7 = vpack.c.bf16 %v248_v0, %v247_v63  ;;  %v218_v10 = vld [vmem:[%s4313_s3 + $0xe8] sm:$0xff] }
  0x37   :  { %2390 = vmatprep.subr.bf16.mxu1 %v2389_v47  ;;  %v231_v6 = vld [vmem:[%s4313_s3 + $0x150] sm:$0xff]  ;;  %v232_v8 = vld [vmem:[%s4313_s3 + $0x158] sm:$0xff]  ;;  %v249_v11 = vld [vmem:[%s4313_s3 + $0x1e0] sm:$0xff]  ;;  %v2367_v13 = vpack.c.bf16 %v200_v5, %v199_v4  ;;  %v2369_v15 = vpack.c.bf16 %v218_v10, %v217_v9 }
  0x38   :  { %v250_v12 = vld [vmem:[%s4313_s3 + $0x1e8] sm:$0xff]  ;;  %v2399_v14 = vpack.c.bf16 %v232_v8, %v231_v6  ;;  %v201_v16 = vld [vmem:[%s4313_s3 + $0x60] sm:$0xff]  ;;  %v219_v21 = vld [vmem:[%s4313_s3 + $0xf0] sm:$0xff] }
  0x39   :  { %2360 = vmatpush3.bf16.msra.mxu0 %v2359_v53  ;;  %v202_v17 = vld [vmem:[%s4313_s3 + $0x68] sm:$0xff]  ;;  %v233_v18 = vld [vmem:[%s4313_s3 + $0x160] sm:$0xff]  ;;  %v2401_v19 = vpack.c.bf16 %v250_v12, %v249_v11  ;;  %v220_v22 = vld [vmem:[%s4313_s3 + $0xf8] sm:$0xff] }
  0x3a   :  { %2392 = vmatpush3.bf16.msra.mxu1 %v2391_v54  ;;  %2362 = vmatprep.subr.bf16.mxu0 %v2361_v55  ;;  %v234_v20 = vld [vmem:[%s4313_s3 + $0x168] sm:$0xff]  ;;  %v251_v23 = vld [vmem:[%s4313_s3 + $0x1f0] sm:$0xff]  ;;  %v252_v24 = vld [vmem:[%s4313_s3 + $0x1f8] sm:$0xff]  ;;  %v2371_v25 = vpack.c.bf16 %v202_v17, %v201_v16  ;;  %v2373_v27 = vpack.c.bf16 %v220_v22, %v219_v21 }
  0x3b   :  { %2394 = vmatprep.subr.bf16.mxu1 %v2393_v59  ;;  %v2403_v26 = vpack.c.bf16 %v234_v20, %v233_v18  ;;  %v203_v28 = vld [vmem:[%s4313_s3 + $0x70] sm:$0xff]  ;;  %v204_v29 = vld [vmem:[%s4313_s3 + $0x78] sm:$0xff]  ;;  %v2405_v31 = vpack.c.bf16 %v252_v24, %v251_v23  ;;  %v269_v33 = vld [vmem:[%s4313_s3 + $0x280] sm:$0xff] }
  0x3c   :  { %v235_v30 = vld [vmem:[%s4313_s3 + $0x170] sm:$0xff]  ;;  %v236_v32 = vld [vmem:[%s4313_s3 + $0x178] sm:$0xff]  ;;  %v270_v34 = vld [vmem:[%s4313_s3 + $0x288] sm:$0xff]  ;;  %v2375_v37 = vpack.c.bf16 %v204_v29, %v203_v28 }
  0x3d   :  { %2364 = vmatpush3.bf16.msra.mxu0 %v2363_v1  ;;  %v301_v35 = vld [vmem:[%s4313_s3 + $0x380] sm:$0xff]  ;;  %v302_v36 = vld [vmem:[%s4313_s3 + $0x388] sm:$0xff]  ;;  %v2407_v38 = vpack.c.bf16 %v236_v32, %v235_v30  ;;  %v2409_v39 = vpack.c.bf16 %v270_v34, %v269_v33  ;;  %v59_v42 = vld [vmem:[#allocation2 + $0x18] sm:$0xff] }
  0x3e   :  { %2396 = vmatpush3.bf16.msra.mxu1 %v2395_v2  ;;  %2366 = vmatprep.subr.bf16.mxu0 %v2365_v3  ;;  %v2441_v40 = vpack.c.bf16 %v302_v36, %v301_v35  ;;  %v57_v41 = vld [vmem:[#allocation2 + $0x8] sm:$0xff]  ;;  %v56_v44 = vld [vmem:[#allocation2] sm:$0xff]  ;;  %v58_v45 = vld [vmem:[#allocation2 + $0x10] sm:$0xff] }
  0x3f   :  { %2398 = vmatprep.subr.bf16.mxu1 %v2397_v7  ;;  %v253_v46 = vld [vmem:[%s4313_s3 + $0x200] sm:$0xff]  ;;  %v254_v47 = vld [vmem:[%s4313_s3 + $0x208] sm:$0xff]  ;;  %v63_v55 = vld [vmem:[#allocation2 + $0x38] sm:$0xff] }
  0x40   :  { %v285_v48 = vld [vmem:[%s4313_s3 + $0x300] sm:$0xff]  ;;  %v286_v49 = vld [vmem:[%s4313_s3 + $0x308] sm:$0xff]  ;;  %v271_v56 = vld [vmem:[%s4313_s3 + $0x290] sm:$0xff]  ;;  %v2411_v58 = vpack.c.bf16 %v254_v47, %v253_v46 }
  0x41   :  { %2368 = vmatpush3.bf16.msra.mxu0 %v2367_v13  ;;  %v61_v54 = vld [vmem:[#allocation2 + $0x28] sm:$0xff]  ;;  %v2443_v59 = vpack.c.bf16 %v286_v49, %v285_v48  ;;  %v272_v60 = vld [vmem:[%s4313_s3 + $0x298] sm:$0xff]  ;;  %v303_v61 = vld [vmem:[%s4313_s3 + $0x390] sm:$0xff] }
  0x42   :  { %2400 = vmatpush3.bf16.msra.mxu1 %v2399_v14  ;;  %2370 = vmatprep.subr.bf16.mxu0 %v2369_v15  ;;  %v304_v62 = vld [vmem:[%s4313_s3 + $0x398] sm:$0xff]  ;;  %v255_v3 = vld [vmem:[%s4313_s3 + $0x210] sm:$0xff]  ;;  %v273_v9 = vld [vmem:[%s4313_s3 + $0x2a0] sm:$0xff]  ;;  %v2413_v10 = vpack.c.bf16 %v272_v60, %v271_v56 }
  0x43   :  { %2402 = vmatprep.subr.bf16.mxu1 %v2401_v19  ;;  %v256_v4 = vld [vmem:[%s4313_s3 + $0x218] sm:$0xff]  ;;  %v287_v7 = vld [vmem:[%s4313_s3 + $0x310] sm:$0xff]  ;;  %v2445_v11 = vpack.c.bf16 %v304_v62, %v303_v61  ;;  %v274_v12 = vld [vmem:[%s4313_s3 + $0x2a8] sm:$0xff] }
  0x44   :  { %v288_v8 = vld [vmem:[%s4313_s3 + $0x318] sm:$0xff]  ;;  %v305_v13 = vld [vmem:[%s4313_s3 + $0x3a0] sm:$0xff]  ;;  %v306_v14 = vld [vmem:[%s4313_s3 + $0x3a8] sm:$0xff]  ;;  %v2415_v17 = vpack.c.bf16 %v256_v4, %v255_v3  ;;  %v2417_v21 = vpack.c.bf16 %v274_v12, %v273_v9 }
  0x45   :  { %2372 = vmatpush3.bf16.msra.mxu0 %v2371_v25  ;;  %v2447_v18 = vpack.c.bf16 %v288_v8, %v287_v7  ;;  %v257_v19 = vld [vmem:[%s4313_s3 + $0x220] sm:$0xff]  ;;  %v258_v20 = vld [vmem:[%s4313_s3 + $0x228] sm:$0xff]  ;;  %v2449_v22 = vpack.c.bf16 %v306_v14, %v305_v13  ;;  %v275_v25 = vld [vmem:[%s4313_s3 + $0x2b0] sm:$0xff] }
  0x46   :  { %2404 = vmatpush3.bf16.msra.mxu1 %v2403_v26  ;;  %2374 = vmatprep.subr.bf16.mxu0 %v2373_v27  ;;  %v289_v23 = vld [vmem:[%s4313_s3 + $0x320] sm:$0xff]  ;;  %v290_v24 = vld [vmem:[%s4313_s3 + $0x328] sm:$0xff]  ;;  %v276_v26 = vld [vmem:[%s4313_s3 + $0x2b8] sm:$0xff]  ;;  %v2419_v29 = vpack.c.bf16 %v258_v20, %v257_v19 }
  0x47   :  { %2406 = vmatprep.subr.bf16.mxu1 %v2405_v31  ;;  %v307_v27 = vld [vmem:[%s4313_s3 + $0x3b0] sm:$0xff]  ;;  %v308_v28 = vld [vmem:[%s4313_s3 + $0x3b8] sm:$0xff]  ;;  %v2451_v30 = vpack.c.bf16 %v290_v24, %v289_v23  ;;  %v2421_v33 = vpack.c.bf16 %v276_v26, %v275_v25  ;;  %v293_v48 = vld [vmem:[%s4313_s3 + $0x340] sm:$0xff] }
  0x48   :  { %v259_v31 = vld [vmem:[%s4313_s3 + $0x230] sm:$0xff]  ;;  %v260_v32 = vld [vmem:[%s4313_s3 + $0x238] sm:$0xff]  ;;  %v2453_v34 = vpack.c.bf16 %v308_v28, %v307_v27  ;;  %v294_v49 = vld [vmem:[%s4313_s3 + $0x348] sm:$0xff] }
  0x49   :  { %2376 = vmatpush3.bf16.msra.mxu0 %v2375_v37  ;;  %v291_v35 = vld [vmem:[%s4313_s3 + $0x330] sm:$0xff]  ;;  %v292_v36 = vld [vmem:[%s4313_s3 + $0x338] sm:$0xff]  ;;  %v277_v37 = vld [vmem:[%s4313_s3 + $0x2c0] sm:$0xff] }
  0x4a   :  { %2408 = vmatpush3.bf16.msra.mxu1 %v2407_v38  ;;  %2410 = vmatprep.subr.bf16.mxu0 %v2409_v39  ;;  %v278_v38 = vld [vmem:[%s4313_s3 + $0x2c8] sm:$0xff]  ;;  %v309_v39 = vld [vmem:[%s4313_s3 + $0x3c0] sm:$0xff]  ;;  %v263_v56 = vld [vmem:[%s4313_s3 + $0x250] sm:$0xff] }
  0x4b   :  { %2442 = vmatprep.subr.bf16.mxu1 %v2441_v40  ;;  %v310_v40 = vld [vmem:[%s4313_s3 + $0x3c8] sm:$0xff]  ;;  %v2425_v46 = vpack.c.bf16 %v278_v38, %v277_v37  ;;  %v295_v61 = vld [vmem:[%s4313_s3 + $0x350] sm:$0xff]  ;;  %v296_v62 = vld [vmem:[%s4313_s3 + $0x358] sm:$0xff] }
  0x4c   :  { %v2457_v47 = vpack.c.bf16 %v310_v40, %v309_v39  ;;  %v281_v3 = vld [vmem:[%s4313_s3 + $0x2e0] sm:$0xff]  ;;  %v282_v4 = vld [vmem:[%s4313_s3 + $0x2e8] sm:$0xff]  ;;  %v2463_v8 = vpack.c.bf16 %v296_v62, %v295_v61  ;;  %v315_v19 = vld [vmem:[%s4313_s3 + $0x3f0] sm:$0xff] }
  0x4d   :  { %v265_v9 = vld [vmem:[%s4313_s3 + $0x260] sm:$0xff]  ;;  %v298_v14 = vld [vmem:[%s4313_s3 + $0x368] sm:$0xff]  ;;  %v316_v20 = vld [vmem:[%s4313_s3 + $0x3f8] sm:$0xff] }
  0x4e   :  { %v297_v13 = vld [vmem:[%s4313_s3 + $0x360] sm:$0xff]  ;;  %v267_v23 = vld [vmem:[%s4313_s3 + $0x270] sm:$0xff]  ;;  %v2469_v25 = vpack.c.bf16 %v316_v20, %v315_v19  ;;  %v268_v26 = vld [vmem:[%s4313_s3 + $0x278] sm:$0xff] }
  0x4f   :  { %v299_v27 = vld [vmem:[%s4313_s3 + $0x370] sm:$0xff]  ;;  %v300_v28 = vld [vmem:[%s4313_s3 + $0x378] sm:$0xff]  ;;  %v621_v37 = vld [vmem:[#allocation5 + $0x8] sm:$0xff] }
  0x50   :  { %v629_v38 = vld [vmem:[#allocation5 + $0x48] sm:$0xff]  ;;  %v623_v39 = vld [vmem:[#allocation5 + $0x18] sm:$0xff]  ;;  %v668_v20 = vld [vmem:[#allocation5 + $0x180] sm:$0xff] }
  0x51   :  { %v2473_v40 = vpack.c.bf16 %v629_v38, %v621_v37  ;;  %v661_v61 = vld [vmem:[#allocation5 + $0x148] sm:$0xff]  ;;  %v679_v19 = vld [vmem:[#allocation5 + $0x1d8] sm:$0xff]  ;;  %v694_v38 = vld [vmem:[#allocation5 + $0x250] sm:$0xff] }
  0xa7   :  { %v3386_v43 = vpop.permute.xlu0 %67 }
  0xa8   :  { %v71_v50 = vmul.f32 %v3386_v43, %v57_v41  ;;  %v73_v51 = vmul.f32 %v3386_v43, %v59_v42  ;;  %v70_v52 = vmul.f32 %v3386_v43, %v56_v44  ;;  %v72_v53 = vmul.f32 %v3386_v43, %v58_v45  ;;  %v261_v44 = vld [vmem:[%s4313_s3 + $0x240] sm:$0xff]  ;;  %v262_v45 = vld [vmem:[%s4313_s3 + $0x248] sm:$0xff] }
  0xa9   :  { %v75_v5 = vmul.f32 %v3386_v43, %v61_v54  ;;  %v77_v6 = vmul.f32 %v3386_v43, %v63_v55  ;;  %v2423_v41 = vpack.c.bf16 %v260_v32, %v259_v31  ;;  %v2455_v42 = vpack.c.bf16 %v292_v36, %v291_v35  ;;  %v60_v31 = vld [vmem:[#allocation2 + $0x20] sm:$0xff]  ;;  %v62_v32 = vld [vmem:[#allocation2 + $0x30] sm:$0xff] }
  0xaa   :  { %v2427_v54 = vpack.c.bf16 %v262_v45, %v261_v44  ;;  %v2459_v55 = vpack.c.bf16 %v294_v49, %v293_v48  ;;  %v628_v44 = vld [vmem:[#allocation5 + $0x40] sm:$0xff]  ;;  %v637_v48 = vld [vmem:[#allocation5 + $0x88] sm:$0xff] }
  0xab   :  { %v3407_v57 = vpop.permute.xlu0 %81 }
  0xac   :  { %v3419_v63 = vadd.f32 %v3407_v57, %v71_v50  ;;  %v3422_v0 = vadd.f32 %v3407_v57, %v73_v51  ;;  %v3425_v1 = vadd.f32 %v3407_v57, %v70_v52  ;;  %v3428_v2 = vadd.f32 %v3407_v57, %v72_v53  ;;  %v279_v50 = vld [vmem:[%s4313_s3 + $0x2d0] sm:$0xff]  ;;  %v280_v51 = vld [vmem:[%s4313_s3 + $0x2d8] sm:$0xff] }
  0xad   :  { %v3461_v15 = vadd.f32 %v3407_v57, %v75_v5  ;;  %v3464_v16 = vadd.f32 %v3407_v57, %v77_v6  ;;  %v311_v52 = vld [vmem:[%s4313_s3 + $0x3d0] sm:$0xff]  ;;  %v312_v53 = vld [vmem:[%s4313_s3 + $0x3d8] sm:$0xff]  ;;  %v313_v5 = vld [vmem:[%s4313_s3 + $0x3e0] sm:$0xff] }
  0xae   :  { %381 = vmatprep.mubr.f32.mxu0 %v3419_v63  ;;  %451 = vmatprep.mubr.f32.mxu1 %v3422_v0  ;;  %v2461_v60 = vpack.c.bf16 %v312_v53, %v311_v52  ;;  %v314_v6 = vld [vmem:[%s4313_s3 + $0x3e8] sm:$0xff] }
  0xaf   :  { %382 = vmatmul.mubr.f32.vlgmr.msra.gmra.mrb[0].mxu0 %v3425_v1  ;;  %452 = vmatmul.mubr.f32.vlgmr.msra.gmra.mrb[0].mxu1 %v3428_v2  ;;  %v2465_v12 = vpack.c.bf16 %v314_v6, %v313_v5  ;;  %v663_v5 = vld [vmem:[#allocation5 + $0x158] sm:$0xff]  ;;  %v652_v6 = vld [vmem:[#allocation5 + $0x100] sm:$0xff] }
  0xb0   :  { %2412 = vmatpush3.bf16.msra.mxu0 %v2411_v58  ;;  %2444 = vmatpush3.bf16.msra.mxu1 %v2443_v59  ;;  %v264_v58 = vld [vmem:[%s4313_s3 + $0x258] sm:$0xff]  ;;  %v2429_v59 = vpack.c.bf16 %v280_v51, %v279_v50 }
  0xb1   :  { %521 = vmatprep.mubr.f32.mxu0 %v3461_v15  ;;  %591 = vmatprep.mubr.f32.mxu1 %v3464_v16  ;;  %v2431_v7 = vpack.c.bf16 %v264_v58, %v263_v56  ;;  %v639_v50 = vld [vmem:[#allocation5 + $0x98] sm:$0xff]  ;;  %v638_v56 = vld [vmem:[#allocation5 + $0x90] sm:$0xff] }
  0xb2   :  { %2414 = vmatprep.subr.bf16.mxu0 %v2413_v10  ;;  %2446 = vmatprep.subr.bf16.mxu1 %v2445_v11  ;;  %v266_v10 = vld [vmem:[%s4313_s3 + $0x268] sm:$0xff]  ;;  %v2433_v11 = vpack.c.bf16 %v282_v4, %v281_v3  ;;  %v647_v51 = vld [vmem:[#allocation5 + $0xd8] sm:$0xff] }
  0xb3   :  { %v2541_v53 = vpack.c.bf16 %v647_v51, %v639_v50  ;;  %v655_v4 = vld [vmem:[#allocation5 + $0x118] sm:$0xff]  ;;  %v717_v50 = vld [vmem:[#allocation5 + $0x308] sm:$0xff] }
  0xb4   :  { %2416 = vmatpush3.bf16.msra.mxu0 %v2415_v17  ;;  %2448 = vmatpush3.bf16.msra.mxu1 %v2447_v18  ;;  %v283_v17 = vld [vmem:[%s4313_s3 + $0x2f0] sm:$0xff]  ;;  %v284_v18 = vld [vmem:[%s4313_s3 + $0x2f8] sm:$0xff]  ;;  %v725_v51 = vld [vmem:[#allocation5 + $0x348] sm:$0xff] }
  0xb5   :  { %2418 = vmatprep.subr.bf16.mxu0 %v2417_v21  ;;  %2450 = vmatprep.subr.bf16.mxu1 %v2449_v22  ;;  %v2435_v21 = vpack.c.bf16 %v266_v10, %v265_v9  ;;  %v2467_v22 = vpack.c.bf16 %v298_v14, %v297_v13  ;;  %v2437_v24 = vpack.c.bf16 %v284_v18, %v283_v17  ;;  %v654_v9 = vld [vmem:[#allocation5 + $0x110] sm:$0xff]  ;;  %v677_v13 = vld [vmem:[#allocation5 + $0x1c8] sm:$0xff]  ;;  %v671_v14 = vld [vmem:[#allocation5 + $0x198] sm:$0xff] }
  0xb6   :  { %v662_v10 = vld [vmem:[#allocation5 + $0x150] sm:$0xff] }
  0xb7   :  { %v2547_v17 = vpack.c.bf16 %v662_v10, %v654_v9  ;;  %v732_v10 = vld [vmem:[#allocation5 + $0x380] sm:$0xff] }
  0xb8   :  { %2420 = vmatpush3.bf16.msra.mxu0 %v2419_v29  ;;  %2452 = vmatpush3.bf16.msra.mxu1 %v2451_v30  ;;  %v2439_v29 = vpack.c.bf16 %v268_v26, %v267_v23  ;;  %v2471_v30 = vpack.c.bf16 %v300_v28, %v299_v27  ;;  %v670_v23 = vld [vmem:[#allocation5 + $0x190] sm:$0xff]  ;;  %v693_v26 = vld [vmem:[#allocation5 + $0x248] sm:$0xff]  ;;  %v687_v27 = vld [vmem:[#allocation5 + $0x218] sm:$0xff] }
  0xb9   :  { %2422 = vmatprep.subr.bf16.mxu0 %v2421_v33  ;;  %2454 = vmatprep.subr.bf16.mxu1 %v2453_v34  ;;  %v74_v33 = vmul.f32 %v3386_v43, %v60_v31  ;;  %v76_v34 = vmul.f32 %v3386_v43, %v62_v32  ;;  %v695_v28 = vld [vmem:[#allocation5 + $0x258] sm:$0xff]  ;;  %v684_v32 = vld [vmem:[#allocation5 + $0x200] sm:$0xff] }
  0xba   :  { %v2553_v37 = vpack.c.bf16 %v695_v28, %v687_v27  ;;  %v758_v28 = vld [vmem:[#allocation5 + $0x450] sm:$0xff] }
  0xbb   :  { %v3603_v35 = vadd.f32 %v3407_v57, %v74_v33  ;;  %v3606_v36 = vadd.f32 %v3407_v57, %v76_v34  ;;  %v645_v57 = vld [vmem:[#allocation5 + $0xc8] sm:$0xff]  ;;  %v692_v33 = vld [vmem:[#allocation5 + $0x240] sm:$0xff]  ;;  %v686_v34 = vld [vmem:[#allocation5 + $0x210] sm:$0xff] }
  0xbc   :  { %2424 = vmatpush3.bf16.msra.mxu0 %v2423_v41  ;;  %2456 = vmatpush3.bf16.msra.mxu1 %v2455_v42  ;;  %v631_v41 = vld [vmem:[#allocation5 + $0x58] sm:$0xff]  ;;  %v620_v42 = vld [vmem:[#allocation5] sm:$0xff]  ;;  %v2477_v52 = vpack.c.bf16 %v645_v57, %v637_v48  ;;  %v702_v48 = vld [vmem:[#allocation5 + $0x290] sm:$0xff] }
  0xbd   :  { %2426 = vmatprep.subr.bf16.mxu0 %v2425_v46  ;;  %2458 = vmatprep.subr.bf16.mxu1 %v2457_v47  ;;  %v2537_v43 = vpack.c.bf16 %v631_v41, %v623_v39  ;;  %v2475_v45 = vpack.c.bf16 %v628_v44, %v620_v42  ;;  %v622_v46 = vld [vmem:[#allocation5 + $0x10] sm:$0xff]  ;;  %v701_v39 = vld [vmem:[#allocation5 + $0x288] sm:$0xff]  ;;  %v703_v41 = vld [vmem:[#allocation5 + $0x298] sm:$0xff]  ;;  %v2491_v44 = vpack.c.bf16 %v692_v33, %v684_v32 }
  0xbe   :  { %v630_v47 = vld [vmem:[#allocation5 + $0x50] sm:$0xff]  ;;  %v711_v42 = vld [vmem:[#allocation5 + $0x2d8] sm:$0xff] }
  0xbf   :  { %v2539_v49 = vpack.c.bf16 %v630_v47, %v622_v46  ;;  %v700_v46 = vld [vmem:[#allocation5 + $0x280] sm:$0xff]  ;;  %v710_v57 = vld [vmem:[#allocation5 + $0x2d0] sm:$0xff]  ;;  %v775_v32 = vld [vmem:[#allocation5 + $0x4d8] sm:$0xff] }
  0xc0   :  { %2428 = vmatpush3.bf16.msra.mxu0 %v2427_v54  ;;  %2460 = vmatpush3.bf16.msra.mxu1 %v2459_v55  ;;  %v636_v54 = vld [vmem:[#allocation5 + $0x80] sm:$0xff] }
  0xc1   :  { %2430 = vmatprep.subr.bf16.mxu0 %v2429_v59  ;;  %2462 = vmatprep.subr.bf16.mxu1 %v2461_v60  ;;  %v644_v55 = vld [vmem:[#allocation5 + $0xc0] sm:$0xff]  ;;  %v646_v59 = vld [vmem:[#allocation5 + $0xd0] sm:$0xff]  ;;  %v653_v60 = vld [vmem:[#allocation5 + $0x108] sm:$0xff] }
  0xc2   :  { %v2479_v58 = vpack.c.bf16 %v644_v55, %v636_v54  ;;  %v2543_v62 = vpack.c.bf16 %v646_v59, %v638_v56  ;;  %v2481_v3 = vpack.c.bf16 %v661_v61, %v653_v60  ;;  %v708_v47 = vld [vmem:[#allocation5 + $0x2c0] sm:$0xff]  ;;  %v2559_v55 = vpack.c.bf16 %v710_v57, %v702_v48  ;;  %v718_v60 = vld [vmem:[#allocation5 + $0x310] sm:$0xff] }
  0xc3   :  { %v2495_v54 = vpack.c.bf16 %v708_v47, %v700_v46  ;;  %v2497_v56 = vpack.c.bf16 %v725_v51, %v717_v50  ;;  %v724_v59 = vld [vmem:[#allocation5 + $0x340] sm:$0xff]  ;;  %v791_v46 = vld [vmem:[#allocation5 + $0x558] sm:$0xff]  ;;  %v782_v51 = vld [vmem:[#allocation5 + $0x510] sm:$0xff] }
  0xc4   :  { %2432 = vmatpush3.bf16.msra.mxu0 %v2431_v7  ;;  %2464 = vmatpush3.bf16.msra.mxu1 %v2463_v8  ;;  %v2545_v7 = vpack.c.bf16 %v663_v5, %v655_v4  ;;  %v660_v8 = vld [vmem:[#allocation5 + $0x140] sm:$0xff]  ;;  %v741_v4 = vld [vmem:[#allocation5 + $0x3c8] sm:$0xff]  ;;  %v735_v5 = vld [vmem:[#allocation5 + $0x398] sm:$0xff] }
  0xc5   :  { %2434 = vmatprep.subr.bf16.mxu0 %v2433_v11  ;;  %2466 = vmatprep.subr.bf16.mxu1 %v2465_v12  ;;  %v2483_v11 = vpack.c.bf16 %v660_v8, %v652_v6  ;;  %v669_v12 = vld [vmem:[#allocation5 + $0x188] sm:$0xff]  ;;  %v743_v6 = vld [vmem:[#allocation5 + $0x3d8] sm:$0xff]  ;;  %v780_v57 = vld [vmem:[#allocation5 + $0x500] sm:$0xff] }
  0xc6   :  { %v2485_v18 = vpack.c.bf16 %v677_v13, %v669_v12  ;;  %v734_v12 = vld [vmem:[#allocation5 + $0x390] sm:$0xff]  ;;  %v2565_v13 = vpack.c.bf16 %v743_v6, %v735_v5  ;;  %v788_v50 = vld [vmem:[#allocation5 + $0x540] sm:$0xff] }
  0xc7   :  { %v806_v6 = vld [vmem:[#allocation5 + $0x5d0] sm:$0xff] }
  0xc8   :  { %2436 = vmatpush3.bf16.msra.mxu0 %v2435_v21  ;;  %2468 = vmatpush3.bf16.msra.mxu1 %v2467_v22  ;;  %v676_v21 = vld [vmem:[#allocation5 + $0x1c0] sm:$0xff]  ;;  %v2549_v22 = vpack.c.bf16 %v679_v19, %v671_v14  ;;  %v742_v14 = vld [vmem:[#allocation5 + $0x3d0] sm:$0xff]  ;;  %v751_v19 = vld [vmem:[#allocation5 + $0x418] sm:$0xff] }
  0xc9   :  { %2438 = vmatprep.subr.bf16.mxu0 %v2437_v24  ;;  %2470 = vmatprep.subr.bf16.mxu1 %v2469_v25  ;;  %v678_v24 = vld [vmem:[#allocation5 + $0x1d0] sm:$0xff]  ;;  %v685_v25 = vld [vmem:[#allocation5 + $0x208] sm:$0xff] }
  0xca   :  { %v2489_v31 = vpack.c.bf16 %v693_v26, %v685_v25  ;;  %v756_v25 = vld [vmem:[#allocation5 + $0x440] sm:$0xff]  ;;  %v750_v26 = vld [vmem:[#allocation5 + $0x410] sm:$0xff] }
  0xcc   :  { %2440 = vmatpush3.bf16.msra.mxu0 %v2439_v29  ;;  %2472 = vmatpush3.bf16.msra.mxu1 %v2471_v30  ;;  %v2487_v29 = vpack.c.bf16 %v676_v21, %v668_v20  ;;  %v2551_v30 = vpack.c.bf16 %v678_v24, %v670_v23  ;;  %v759_v20 = vld [vmem:[#allocation5 + $0x458] sm:$0xff]  ;;  %v748_v24 = vld [vmem:[#allocation5 + $0x400] sm:$0xff] }
  0xcd   :  { %2474 = vmatprep.subr.bf16.mxu0 %v2473_v40  ;;  %2538 = vmatprep.subr.bf16.mxu1 %v2537_v43  ;;  %v709_v40 = vld [vmem:[#allocation5 + $0x2c8] sm:$0xff]  ;;  %v2555_v43 = vpack.c.bf16 %v694_v38, %v686_v34  ;;  %v2569_v27 = vpack.c.bf16 %v759_v20, %v751_v19  ;;  %v2507_v33 = vpack.c.bf16 %v756_v25, %v748_v24  ;;  %v764_v38 = vld [vmem:[#allocation5 + $0x480] sm:$0xff]  ;;  %v822_v20 = vld [vmem:[#allocation5 + $0x650] sm:$0xff] }
  0xce   :  { %v2571_v34 = vpack.c.bf16 %v758_v28, %v750_v26  ;;  %v839_v24 = vld [vmem:[#allocation5 + $0x6d8] sm:$0xff]  ;;  %v828_v26 = vld [vmem:[#allocation5 + $0x680] sm:$0xff] }
  0xcf   :  { %522 = vmatmul.mubr.f32.vlgmr.msra.gmra.mrb[2].mxu0 %v3603_v35  ;;  %592 = vmatmul.mubr.f32.vlgmr.msra.gmra.mrb[2].mxu1 %v3606_v36 }
  0xd0   :  { %2476 = vmatpush1.bf16.msra.mxu0 %v2475_v45  ;;  %2540 = vmatpush1.bf16.msra.mxu1 %v2539_v49  ;;  %v2493_v45 = vpack.c.bf16 %v709_v40, %v701_v39  ;;  %v2557_v49 = vpack.c.bf16 %v711_v42, %v703_v41  ;;  %v772_v39 = vld [vmem:[#allocation5 + $0x4c0] sm:$0xff]  ;;  %v766_v40 = vld [vmem:[#allocation5 + $0x490] sm:$0xff] }
  0xd1   :  { %2478 = vmatprep.subr.bf16.mxu0 %v2477_v52  ;;  %2542 = vmatprep.subr.bf16.mxu1 %v2541_v53  ;;  %v719_v52 = vld [vmem:[#allocation5 + $0x318] sm:$0xff]  ;;  %v774_v42 = vld [vmem:[#allocation5 + $0x4d0] sm:$0xff]  ;;  %v2511_v47 = vpack.c.bf16 %v772_v39, %v764_v38 }
  0xd2   :  { %v727_v53 = vld [vmem:[#allocation5 + $0x358] sm:$0xff]  ;;  %v2575_v48 = vpack.c.bf16 %v774_v42, %v766_v40 }
  0xd3   :  { %v2561_v61 = vpack.c.bf16 %v727_v53, %v719_v52  ;;  %v790_v53 = vld [vmem:[#allocation5 + $0x550] sm:$0xff]  ;;  %v847_v39 = vld [vmem:[#allocation5 + $0x718] sm:$0xff] }
  0xd4   :  { %2480 = vmatpush1.bf16.msra.mxu0 %v2479_v58  ;;  %2544 = vmatpush1.bf16.msra.mxu1 %v2543_v62  ;;  %v716_v58 = vld [vmem:[#allocation5 + $0x300] sm:$0xff]  ;;  %v726_v62 = vld [vmem:[#allocation5 + $0x350] sm:$0xff]  ;;  %v855_v40 = vld [vmem:[#allocation5 + $0x758] sm:$0xff] }
  0xd5   :  { %2482 = vmatprep.subr.bf16.mxu0 %v2481_v3  ;;  %2546 = vmatprep.subr.bf16.mxu1 %v2545_v7  ;;  %v733_v3 = vld [vmem:[#allocation5 + $0x388] sm:$0xff]  ;;  %v2499_v7 = vpack.c.bf16 %v724_v59, %v716_v58  ;;  %v2563_v8 = vpack.c.bf16 %v726_v62, %v718_v60  ;;  %v807_v58 = vld [vmem:[#allocation5 + $0x5d8] sm:$0xff]  ;;  %v2515_v59 = vpack.c.bf16 %v788_v50, %v780_v57  ;;  %v796_v62 = vld [vmem:[#allocation5 + $0x580] sm:$0xff] }
  0xd6   :  { %v2501_v9 = vpack.c.bf16 %v741_v4, %v733_v3  ;;  %v2579_v60 = vpack.c.bf16 %v790_v53, %v782_v51  ;;  %v804_v3 = vld [vmem:[#allocation5 + $0x5c0] sm:$0xff]  ;;  %v798_v4 = vld [vmem:[#allocation5 + $0x590] sm:$0xff]  ;;  %v2593_v50 = vpack.c.bf16 %v855_v40, %v847_v39  ;;  %v869_v53 = vld [vmem:[#allocation5 + $0x7c8] sm:$0xff] }
  0xd7   :  { %v846_v57 = vld [vmem:[#allocation5 + $0x710] sm:$0xff] }
  0xd8   :  { %2484 = vmatpush1.bf16.msra.mxu0 %v2483_v11  ;;  %2548 = vmatpush1.bf16.msra.mxu1 %v2547_v17  ;;  %v740_v11 = vld [vmem:[#allocation5 + $0x3c0] sm:$0xff]  ;;  %v749_v17 = vld [vmem:[#allocation5 + $0x408] sm:$0xff]  ;;  %v854_v51 = vld [vmem:[#allocation5 + $0x750] sm:$0xff] }
  0xd9   :  { %2486 = vmatprep.subr.bf16.mxu0 %v2485_v18  ;;  %2550 = vmatprep.subr.bf16.mxu1 %v2549_v22  ;;  %v757_v18 = vld [vmem:[#allocation5 + $0x448] sm:$0xff]  ;;  %v2503_v21 = vpack.c.bf16 %v740_v11, %v732_v10  ;;  %v2567_v22 = vpack.c.bf16 %v742_v14, %v734_v12  ;;  %v823_v10 = vld [vmem:[#allocation5 + $0x658] sm:$0xff]  ;;  %v2519_v11 = vpack.c.bf16 %v804_v3, %v796_v62  ;;  %v812_v14 = vld [vmem:[#allocation5 + $0x600] sm:$0xff] }
  0xda   :  { %v2505_v23 = vpack.c.bf16 %v757_v18, %v749_v17  ;;  %v2583_v12 = vpack.c.bf16 %v806_v6, %v798_v4  ;;  %v820_v17 = vld [vmem:[#allocation5 + $0x640] sm:$0xff]  ;;  %v814_v18 = vld [vmem:[#allocation5 + $0x610] sm:$0xff] }
  0xdb   :  { %v2523_v25 = vpack.c.bf16 %v820_v17, %v812_v14  ;;  %v860_v14 = vld [vmem:[#allocation5 + $0x780] sm:$0xff]  ;;  %v626_v39 = vld [vmem:[#allocation5 + $0x30] sm:$0xff] }
  0xdc   :  { %2488 = vmatpush1.bf16.msra.mxu0 %v2487_v29  ;;  %2552 = vmatpush1.bf16.msra.mxu1 %v2551_v30  ;;  %v765_v29 = vld [vmem:[#allocation5 + $0x488] sm:$0xff]  ;;  %v868_v17 = vld [vmem:[#allocation5 + $0x7c0] sm:$0xff]  ;;  %v634_v40 = vld [vmem:[#allocation5 + $0x70] sm:$0xff] }
  0xdd   :  { %2490 = vmatprep.subr.bf16.mxu0 %v2489_v31  ;;  %2554 = vmatprep.subr.bf16.mxu1 %v2553_v37  ;;  %v773_v30 = vld [vmem:[#allocation5 + $0x4c8] sm:$0xff]  ;;  %v767_v31 = vld [vmem:[#allocation5 + $0x498] sm:$0xff] }
  0xde   :  { %v2509_v37 = vpack.c.bf16 %v773_v30, %v765_v29  ;;  %v2573_v41 = vpack.c.bf16 %v775_v32, %v767_v31  ;;  %v836_v29 = vld [vmem:[#allocation5 + $0x6c0] sm:$0xff]  ;;  %v830_v30 = vld [vmem:[#allocation5 + $0x690] sm:$0xff] }
  0xdf   :  { %v838_v31 = vld [vmem:[#allocation5 + $0x6d0] sm:$0xff] }
  0xe0   :  { %2492 = vmatpush1.bf16.msra.mxu0 %v2491_v44  ;;  %2556 = vmatpush1.bf16.msra.mxu1 %v2555_v43  ;;  %v781_v44 = vld [vmem:[#allocation5 + $0x508] sm:$0xff] }
  0xe1   :  { %2494 = vmatprep.subr.bf16.mxu0 %v2493_v45  ;;  %2558 = vmatprep.subr.bf16.mxu1 %v2557_v49  ;;  %v789_v43 = vld [vmem:[#allocation5 + $0x548] sm:$0xff]  ;;  %v783_v45 = vld [vmem:[#allocation5 + $0x518] sm:$0xff] }
  0xe2   :  { %v2513_v49 = vpack.c.bf16 %v789_v43, %v781_v44  ;;  %v2577_v52 = vpack.c.bf16 %v791_v46, %v783_v45  ;;  %v2527_v44 = vpack.c.bf16 %v836_v29, %v828_v26  ;;  %v2591_v43 = vpack.c.bf16 %v838_v31, %v830_v30 }
  0xe4   :  { %2496 = vmatpush1.bf16.msra.mxu0 %v2495_v54  ;;  %2560 = vmatpush1.bf16.msra.mxu1 %v2559_v55  ;;  %v797_v54 = vld [vmem:[#allocation5 + $0x588] sm:$0xff] }
  0xe5   :  { %2498 = vmatprep.subr.bf16.mxu0 %v2497_v56  ;;  %2562 = vmatprep.subr.bf16.mxu1 %v2561_v61  ;;  %v805_v55 = vld [vmem:[#allocation5 + $0x5c8] sm:$0xff]  ;;  %v799_v56 = vld [vmem:[#allocation5 + $0x598] sm:$0xff] }
  0xe6   :  { %v2517_v61 = vpack.c.bf16 %v805_v55, %v797_v54  ;;  %v2581_v5 = vpack.c.bf16 %v807_v58, %v799_v56  ;;  %v863_v55 = vld [vmem:[#allocation5 + $0x798] sm:$0xff] }
  0xe7   :  { %v871_v56 = vld [vmem:[#allocation5 + $0x7d8] sm:$0xff] }
  0xe8   :  { %2500 = vmatpush1.bf16.msra.mxu0 %v2499_v7  ;;  %2564 = vmatpush1.bf16.msra.mxu1 %v2563_v8  ;;  %v813_v7 = vld [vmem:[#allocation5 + $0x608] sm:$0xff] }
  0xe9   :  { %2502 = vmatprep.subr.bf16.mxu0 %v2501_v9  ;;  %2566 = vmatprep.subr.bf16.mxu1 %v2565_v13  ;;  %v821_v8 = vld [vmem:[#allocation5 + $0x648] sm:$0xff]  ;;  %v815_v9 = vld [vmem:[#allocation5 + $0x618] sm:$0xff] }
  0xea   :  { %v2521_v13 = vpack.c.bf16 %v821_v8, %v813_v7  ;;  %v2585_v19 = vpack.c.bf16 %v823_v10, %v815_v9 }
  0xec   :  { %2504 = vmatpush1.bf16.msra.mxu0 %v2503_v21  ;;  %2568 = vmatpush1.bf16.msra.mxu1 %v2567_v22  ;;  %v829_v21 = vld [vmem:[#allocation5 + $0x688] sm:$0xff] }
  0xed   :  { %2506 = vmatprep.subr.bf16.mxu0 %v2505_v23  ;;  %2570 = vmatprep.subr.bf16.mxu1 %v2569_v27  ;;  %v837_v22 = vld [vmem:[#allocation5 + $0x6c8] sm:$0xff]  ;;  %v831_v23 = vld [vmem:[#allocation5 + $0x698] sm:$0xff]  ;;  %v2587_v27 = vpack.c.bf16 %v822_v20, %v814_v18  ;;  %v862_v18 = vld [vmem:[#allocation5 + $0x790] sm:$0xff] }
  0xee   :  { %v2525_v28 = vpack.c.bf16 %v837_v22, %v829_v21  ;;  %v2589_v32 = vpack.c.bf16 %v839_v24, %v831_v23  ;;  %v870_v20 = vld [vmem:[#allocation5 + $0x7d0] sm:$0xff]  ;;  %v625_v23 = vld [vmem:[#allocation5 + $0x28] sm:$0xff] }
  0xef   :  { %v2599_v21 = vpack.c.bf16 %v870_v20, %v862_v18  ;;  %v633_v24 = vld [vmem:[#allocation5 + $0x68] sm:$0xff]  ;;  %v680_v20 = vld [vmem:[#allocation5 + $0x1e0] sm:$0xff] }
  0xf0   :  { %2508 = vmatpush1.bf16.msra.mxu0 %v2507_v33  ;;  %2572 = vmatpush1.bf16.msra.mxu1 %v2571_v34  ;;  %v845_v33 = vld [vmem:[#allocation5 + $0x708] sm:$0xff] }
  0xf1   :  { %2510 = vmatprep.subr.bf16.mxu0 %v2509_v37  ;;  %2574 = vmatprep.subr.bf16.mxu1 %v2573_v41  ;;  %v853_v34 = vld [vmem:[#allocation5 + $0x748] sm:$0xff] }
  0xf4   :  { %2512 = vmatpush1.bf16.msra.mxu0 %v2511_v47  ;;  %2576 = vmatpush1.bf16.msra.mxu1 %v2575_v48  ;;  %v2529_v47 = vpack.c.bf16 %v853_v34, %v845_v33  ;;  %v844_v48 = vld [vmem:[#allocation5 + $0x700] sm:$0xff] }
  0xf5   :  { %2514 = vmatprep.subr.bf16.mxu0 %v2513_v49  ;;  %2578 = vmatprep.subr.bf16.mxu1 %v2577_v52  ;;  %v852_v49 = vld [vmem:[#allocation5 + $0x740] sm:$0xff]  ;;  %v861_v52 = vld [vmem:[#allocation5 + $0x788] sm:$0xff] }
  0xf6   :  { %v2531_v58 = vpack.c.bf16 %v852_v49, %v844_v48  ;;  %v651_v48 = vld [vmem:[#allocation5 + $0xf8] sm:$0xff] }
  0xf8   :  { %2516 = vmatpush1.bf16.msra.mxu0 %v2515_v59  ;;  %2580 = vmatpush1.bf16.msra.mxu1 %v2579_v60  ;;  %v2595_v59 = vpack.c.bf16 %v854_v51, %v846_v57  ;;  %v2533_v60 = vpack.c.bf16 %v869_v53, %v861_v52  ;;  %v2667_v57 = vpack.c.bf16 %v634_v40, %v626_v39  ;;  %v648_v51 = vld [vmem:[#allocation5 + $0xe0] sm:$0xff]  ;;  %v705_v39 = vld [vmem:[#allocation5 + $0x2a8] sm:$0xff] }
  0xf9   :  { %2518 = vmatprep.subr.bf16.mxu0 %v2517_v61  ;;  %2582 = vmatprep.subr.bf16.mxu1 %v2581_v5  ;;  %v2597_v61 = vpack.c.bf16 %v871_v56, %v863_v55  ;;  %v650_v55 = vld [vmem:[#allocation5 + $0xf0] sm:$0xff]  ;;  %v657_v56 = vld [vmem:[#allocation5 + $0x128] sm:$0xff] }
  0xfa   :  { %v713_v40 = vld [vmem:[#allocation5 + $0x2e8] sm:$0xff] }
  0xfc   :  { %2520 = vmatpush1.bf16.msra.mxu0 %v2519_v11  ;;  %2584 = vmatpush1.bf16.msra.mxu1 %v2583_v12 }
  0xfd   :  { %2522 = vmatprep.subr.bf16.mxu0 %v2521_v13  ;;  %2586 = vmatprep.subr.bf16.mxu1 %v2585_v19  ;;  %v2535_v19 = vpack.c.bf16 %v868_v17, %v860_v14  ;;  %v683_v14 = vld [vmem:[#allocation5 + $0x1f8] sm:$0xff] }
 0x100   :  { %2524 = vmatpush1.bf16.msra.mxu0 %v2523_v25  ;;  %2588 = vmatpush1.bf16.msra.mxu1 %v2587_v27  ;;  %v627_v25 = vld [vmem:[#allocation5 + $0x38] sm:$0xff]  ;;  %v2601_v27 = vpack.c.bf16 %v633_v24, %v625_v23  ;;  %v674_v23 = vld [vmem:[#allocation5 + $0x1b0] sm:$0xff] }
 0x101   :  { %2526 = vmatprep.subr.bf16.mxu0 %v2525_v28  ;;  %2590 = vmatprep.subr.bf16.mxu1 %v2589_v32  ;;  %v635_v28 = vld [vmem:[#allocation5 + $0x78] sm:$0xff]  ;;  %v682_v24 = vld [vmem:[#allocation5 + $0x1f0] sm:$0xff] }
 0x102   :  { %v2665_v29 = vpack.c.bf16 %v635_v28, %v627_v25  ;;  %v689_v25 = vld [vmem:[#allocation5 + $0x228] sm:$0xff]  ;;  %v699_v28 = vld [vmem:[#allocation5 + $0x278] sm:$0xff] }
 0x104   :  { %2528 = vmatpush1.bf16.msra.mxu0 %v2527_v44  ;;  %2592 = vmatpush1.bf16.msra.mxu1 %v2591_v43 }
 0x105   :  { %2530 = vmatprep.subr.bf16.mxu0 %v2529_v47  ;;  %2594 = vmatprep.subr.bf16.mxu1 %v2593_v50  ;;  %v643_v47 = vld [vmem:[#allocation5 + $0xb8] sm:$0xff]  ;;  %v640_v50 = vld [vmem:[#allocation5 + $0xa0] sm:$0xff] }
 0x108   :  { %2532 = vmatpush1.bf16.msra.mxu0 %v2531_v58  ;;  %2596 = vmatpush1.bf16.msra.mxu1 %v2595_v59  ;;  %v2669_v59 = vpack.c.bf16 %v651_v48, %v643_v47  ;;  %v2621_v47 = vpack.c.bf16 %v713_v40, %v705_v39  ;;  %v776_v39 = vld [vmem:[#allocation5 + $0x4e0] sm:$0xff] }
 0x109   :  { %2534 = vmatprep.subr.bf16.mxu0 %v2533_v60  ;;  %2598 = vmatprep.subr.bf16.mxu1 %v2597_v61  ;;  %v665_v60 = vld [vmem:[#allocation5 + $0x168] sm:$0xff]  ;;  %v659_v61 = vld [vmem:[#allocation5 + $0x138] sm:$0xff] }
 0x10c   :  { %2536 = vmatpush1.bf16.msra.mxu0 %v2535_v19  ;;  %2600 = vmatpush1.bf16.msra.mxu1 %v2599_v21  ;;  %v672_v19 = vld [vmem:[#allocation5 + $0x1a0] sm:$0xff] }
 0x10d   :  { %2602 = vmatprep.subr.bf16.mxu0 %v2601_v27  ;;  %2666 = vmatprep.subr.bf16.mxu1 %v2665_v29  ;;  %v691_v27 = vld [vmem:[#allocation5 + $0x238] sm:$0xff]  ;;  %v2615_v29 = vpack.c.bf16 %v680_v20, %v672_v19  ;;  %v761_v19 = vld [vmem:[#allocation5 + $0x468] sm:$0xff] }
 0x10e   :  { %v755_v20 = vld [vmem:[#allocation5 + $0x438] sm:$0xff] }
 0x182   :  { %v2097_v37 = vpop.f32.mrb[0].mxu0  ;;  %v2132_v38 = vpop.f32.mrb[0].mxu1 }
 0x183   :  { %v2098_v41 = vpop.f32.mrb[1].mxu0  ;;  %v2133_v42 = vpop.f32.mrb[1].mxu1 }
 0x184   :  { %v2099_v45 = vadd.f32 %v2098_v41, %v2097_v37  ;;  %v2134_v46 = vadd.f32 %v2133_v42, %v2132_v38  ;;  %v624_v37 = vld [vmem:[#allocation5 + $0x20] sm:$0xff]  ;;  %v641_v42 = vld [vmem:[#allocation5 + $0xa8] sm:$0xff] }
 0x185   :  { %v632_v38 = vld [vmem:[#allocation5 + $0x60] sm:$0xff] }
 0x186   :  { %v454_v54 = vadd.f32 %v2134_v46, %v2099_v45  ;;  %v649_v46 = vld [vmem:[#allocation5 + $0xe8] sm:$0xff]  ;;  %v2603_v49 = vpack.c.bf16 %v632_v38, %v624_v37  ;;  %v690_v37 = vld [vmem:[#allocation5 + $0x230] sm:$0xff] }
 0x187   :  { %v2605_v58 = vpack.c.bf16 %v649_v46, %v641_v42  ;;  %v698_v38 = vld [vmem:[#allocation5 + $0x270] sm:$0xff]  ;;  %v715_v42 = vld [vmem:[#allocation5 + $0x2f8] sm:$0xff]  ;;  %v712_v46 = vld [vmem:[#allocation5 + $0x2e0] sm:$0xff] }
 0x1a2   :  { %v2167_v62 = vpop.f32.mrb[2].mxu0  ;;  %v2202_v3 = vpop.f32.mrb[2].mxu1 }
 0x1a3   :  { %v2168_v4 = vpop.f32.mrb[3].mxu0  ;;  %v2203_v5 = vpop.f32.mrb[3].mxu1 }
 0x1a4   :  { %v2169_v6 = vadd.f32 %v2168_v4, %v2167_v62  ;;  %v2204_v7 = vadd.f32 %v2203_v5, %v2202_v3  ;;  %v667_v62 = vld [vmem:[#allocation5 + $0x178] sm:$0xff]  ;;  %v2607_v3 = vpack.c.bf16 %v648_v51, %v640_v50  ;;  %v656_v5 = vld [vmem:[#allocation5 + $0x120] sm:$0xff]  ;;  %v721_v50 = vld [vmem:[#allocation5 + $0x328] sm:$0xff] }
 0x1a5   :  { %v729_v51 = vld [vmem:[#allocation5 + $0x368] sm:$0xff] }
 0x1a6   :  { %v524_v8 = vadd.f32 %v2169_v6, %v454_v54  ;;  %v642_v54 = vld [vmem:[#allocation5 + $0xb0] sm:$0xff]  ;;  %v664_v6 = vld [vmem:[#allocation5 + $0x160] sm:$0xff] }
 0x1a7   :  { %v2671_v4 = vpack.c.bf16 %v650_v55, %v642_v54  ;;  %v2611_v17 = vpack.c.bf16 %v664_v6, %v656_v5  ;;  %v731_v54 = vld [vmem:[#allocation5 + $0x378] sm:$0xff]  ;;  %v745_v5 = vld [vmem:[#allocation5 + $0x3e8] sm:$0xff] }
 0x1a8   :  { %v594_v9 = vadd.f32 %v2204_v7, %v524_v8  ;;  %v2609_v7 = vpack.c.bf16 %v665_v60, %v657_v56  ;;  %v2673_v8 = vpack.c.bf16 %v667_v62, %v659_v61  ;;  %v2625_v60 = vpack.c.bf16 %v729_v51, %v721_v50  ;;  %v722_v62 = vld [vmem:[#allocation5 + $0x330] sm:$0xff]  ;;  %v739_v6 = vld [vmem:[#allocation5 + $0x3b8] sm:$0xff]  ;;  %v792_v50 = vld [vmem:[#allocation5 + $0x560] sm:$0xff] }
 0x1aa   :  { %v597_v10 = vmul.f32 5.0, %v594_v9 }
 0x1ac   :  { %v599_v11 = vmul.f32 1.442695, %v597_v10  ;;  %vm598_vm0 = vcmp.gt.f32.partialorder %v597_v10, 20.0  ;;  %v666_v10 = vld [vmem:[#allocation5 + $0x170] sm:$0xff] }
 0x1ae   :  { %2934 = vpow2.f32 %v599_v11  ;;  %v673_v11 = vld [vmem:[#allocation5 + $0x1a8] sm:$0xff] }
 0x1b8   :  { %v2935_v12 = vpop.eup %2934 }
 0x1b9   :  { %v601_v13 = vadd.f32 1.0, %v2935_v12  ;;  %v681_v12 = vld [vmem:[#allocation5 + $0x1e8] sm:$0xff] }
 0x1ba   :  { %v2613_v21 = vpack.c.bf16 %v681_v12, %v673_v11  ;;  %v744_v11 = vld [vmem:[#allocation5 + $0x3e0] sm:$0xff] }
 0x1bb   :  { %2936 = vlog2.f32 %v601_v13  ;;  %v675_v13 = vld [vmem:[#allocation5 + $0x1b8] sm:$0xff] }
 0x1c5   :  { %v2937_v22 = vpop.eup %2936 }
 0x1c6   :  { %v603_v26 = vmul.f32 0.6931472, %v2937_v22  ;;  %v2677_v22 = vpack.c.bf16 %v683_v14, %v675_v13  ;;  %v738_v14 = vld [vmem:[#allocation5 + $0x3b0] sm:$0xff] }
 0x1c8   :  { %v604_v30 = vmul.f32 0.2, %v603_v26  ;;  %v697_v26 = vld [vmem:[#allocation5 + $0x268] sm:$0xff] }
 0x1ca   :  { %v605_v31 = vsel %vm598_vm0, %v594_v9, %v604_v30  ;;  %v658_v9 = vld [vmem:[#allocation5 + $0x130] sm:$0xff]  ;;  %v2679_v30 = vpack.c.bf16 %v682_v24, %v674_v23  ;;  %v752_v24 = vld [vmem:[#allocation5 + $0x420] sm:$0xff] }
 0x1cb   :  { %v607_v32 = vrot.slane %v605_v31, 2  ;;  %v613_v33 = vrot.slane %v605_v31, 6  ;;  %v611_v45 = vrot.slane %v605_v31, 4  ;;  %v2675_v18 = vpack.c.bf16 %v666_v10, %v658_v9  ;;  %v736_v10 = vld [vmem:[#allocation5 + $0x3a0] sm:$0xff] }
 0x1cd   :  { %v2929_v34 = vpack.i.bf16 %v607_v32, %v613_v33  ;;  %v696_v32 = vld [vmem:[#allocation5 + $0x260] sm:$0xff]  ;;  %v2617_v33 = vpack.c.bf16 %v697_v26, %v689_v25 }
 0x1ce   :  { %v760_v25 = vld [vmem:[#allocation5 + $0x460] sm:$0xff] }
 0x1cf   :  { %2930 = vrot.lane.b32.xlu1 %v2929_v34, %s3095_s27  ;;  %v2681_v34 = vpack.c.bf16 %v699_v28, %v691_v27  ;;  %v754_v28 = vld [vmem:[#allocation5 + $0x430] sm:$0xff] }
 0x241   :  { %v2931_v41 = vpop.permute.xlu1 %2930 }
 0x242   :  { %v2933_v44 = vunpack.i.h.bf16 %v2931_v41  ;;  %v2932_v43 = vunpack.i.l.bf16 %v2931_v41  ;;  %v707_v41 = vld [vmem:[#allocation5 + $0x2b8] sm:$0xff] }
 0x243   :  { %v2685_v48 = vpack.c.bf16 %v715_v42, %v707_v41  ;;  %v770_v42 = vld [vmem:[#allocation5 + $0x4b0] sm:$0xff] }
 0x244   :  { %v619_v52 = vsel %vm617_vm1, %v611_v45, %v2932_v43  ;;  %v3613_v53 = vsel %vm617_vm1, %v605_v31, %v2933_v44  ;;  %v688_v31 = vld [vmem:[#allocation5 + $0x220] sm:$0xff]  ;;  %v2683_v43 = vpack.c.bf16 %v698_v38, %v690_v37 }
 0x245   :  { %982 = vmatprep.mubr.f32.mxu0 %v619_v52  ;;  %1053 = vmatprep.mubr.f32.mxu1 %v619_v52  ;;  %v2619_v44 = vpack.c.bf16 %v696_v32, %v688_v31  ;;  %v704_v45 = vld [vmem:[#allocation5 + $0x2a0] sm:$0xff]  ;;  %v777_v31 = vld [vmem:[#allocation5 + $0x4e8] sm:$0xff]  ;;  %v771_v32 = vld [vmem:[#allocation5 + $0x4b8] sm:$0xff] }
 0x246   :  { %983 = vmatmul.mubr.f32.vlgmr.msra.gmra.mrb[4].mxu0 %v3613_v53  ;;  %1054 = vmatmul.mubr.f32.vlgmr.msra.gmra.mrb[4].mxu1 %v3613_v53  ;;  %v2623_v55 = vpack.c.bf16 %v712_v46, %v704_v45  ;;  %v768_v38 = vld [vmem:[#allocation5 + $0x4a0] sm:$0xff]  ;;  %v793_v45 = vld [vmem:[#allocation5 + $0x568] sm:$0xff]  ;;  %v787_v46 = vld [vmem:[#allocation5 + $0x538] sm:$0xff] }
 0x247   :  { %2604 = vmatpush1.bf16.msra.mxu0 %v2603_v49  ;;  %2668 = vmatpush1.bf16.msra.mxu1 %v2667_v57  ;;  %v706_v49 = vld [vmem:[#allocation5 + $0x2b0] sm:$0xff] }
 0x248   :  { %1124 = vmatprep.mubr.f32.mxu0 %v619_v52  ;;  %1195 = vmatprep.mubr.f32.mxu1 %v619_v52  ;;  %v714_v57 = vld [vmem:[#allocation5 + $0x2f0] sm:$0xff]  ;;  %v723_v52 = vld [vmem:[#allocation5 + $0x338] sm:$0xff] }
 0x249   :  { %2606 = vmatprep.subr.bf16.mxu0 %v2605_v58  ;;  %2670 = vmatprep.subr.bf16.mxu1 %v2669_v59  ;;  %v2687_v56 = vpack.c.bf16 %v714_v57, %v706_v49  ;;  %v720_v58 = vld [vmem:[#allocation5 + $0x320] sm:$0xff]  ;;  %v2689_v61 = vpack.c.bf16 %v731_v54, %v723_v52  ;;  %v786_v54 = vld [vmem:[#allocation5 + $0x530] sm:$0xff] }
 0x24a   :  { %v728_v59 = vld [vmem:[#allocation5 + $0x360] sm:$0xff] }
 0x24b   :  { %2608 = vmatpush1.bf16.msra.mxu0 %v2607_v3  ;;  %2672 = vmatpush1.bf16.msra.mxu1 %v2671_v4  ;;  %v730_v3 = vld [vmem:[#allocation5 + $0x370] sm:$0xff]  ;;  %v737_v4 = vld [vmem:[#allocation5 + $0x3a8] sm:$0xff]  ;;  %v784_v57 = vld [vmem:[#allocation5 + $0x520] sm:$0xff] }
 0x24c   :  { %2610 = vmatprep.subr.bf16.mxu0 %v2609_v7  ;;  %2674 = vmatprep.subr.bf16.mxu1 %v2673_v8  ;;  %v747_v7 = vld [vmem:[#allocation5 + $0x3f8] sm:$0xff]  ;;  %v2627_v8 = vpack.c.bf16 %v728_v59, %v720_v58  ;;  %v2691_v9 = vpack.c.bf16 %v730_v3, %v722_v62  ;;  %v2629_v12 = vpack.c.bf16 %v745_v5, %v737_v4  ;;  %v809_v58 = vld [vmem:[#allocation5 + $0x5e8] sm:$0xff]  ;;  %v800_v3 = vld [vmem:[#allocation5 + $0x5a0] sm:$0xff] }
 0x24d   :  { %v2693_v13 = vpack.c.bf16 %v747_v7, %v739_v6  ;;  %v803_v59 = vld [vmem:[#allocation5 + $0x5b8] sm:$0xff]  ;;  %v808_v4 = vld [vmem:[#allocation5 + $0x5e0] sm:$0xff]  ;;  %v802_v7 = vld [vmem:[#allocation5 + $0x5b0] sm:$0xff] }
 0x24f   :  { %2612 = vmatpush1.bf16.msra.mxu0 %v2611_v17  ;;  %2676 = vmatpush1.bf16.msra.mxu1 %v2675_v18  ;;  %v746_v17 = vld [vmem:[#allocation5 + $0x3f0] sm:$0xff]  ;;  %v753_v18 = vld [vmem:[#allocation5 + $0x428] sm:$0xff] }
 0x250   :  { %2614 = vmatprep.subr.bf16.mxu0 %v2613_v21  ;;  %2678 = vmatprep.subr.bf16.mxu1 %v2677_v22  ;;  %v763_v21 = vld [vmem:[#allocation5 + $0x478] sm:$0xff]  ;;  %v2631_v22 = vpack.c.bf16 %v744_v11, %v736_v10  ;;  %v2695_v23 = vpack.c.bf16 %v746_v17, %v738_v14  ;;  %v2633_v26 = vpack.c.bf16 %v761_v19, %v753_v18  ;;  %v825_v10 = vld [vmem:[#allocation5 + $0x668] sm:$0xff]  ;;  %v816_v17 = vld [vmem:[#allocation5 + $0x620] sm:$0xff] }
 0x251   :  { %v2697_v27 = vpack.c.bf16 %v763_v21, %v755_v20  ;;  %v819_v11 = vld [vmem:[#allocation5 + $0x638] sm:$0xff]  ;;  %v824_v18 = vld [vmem:[#allocation5 + $0x660] sm:$0xff]  ;;  %v818_v21 = vld [vmem:[#allocation5 + $0x630] sm:$0xff] }
 0x253   :  { %2616 = vmatpush1.bf16.msra.mxu0 %v2615_v29  ;;  %2680 = vmatpush1.bf16.msra.mxu1 %v2679_v30  ;;  %v762_v29 = vld [vmem:[#allocation5 + $0x470] sm:$0xff]  ;;  %v769_v30 = vld [vmem:[#allocation5 + $0x4a8] sm:$0xff] }
 0x254   :  { %2618 = vmatprep.subr.bf16.mxu0 %v2617_v33  ;;  %2682 = vmatprep.subr.bf16.mxu1 %v2681_v34  ;;  %v779_v33 = vld [vmem:[#allocation5 + $0x4f8] sm:$0xff]  ;;  %v2635_v34 = vpack.c.bf16 %v760_v25, %v752_v24  ;;  %v2699_v37 = vpack.c.bf16 %v762_v29, %v754_v28  ;;  %v2637_v40 = vpack.c.bf16 %v777_v31, %v769_v30  ;;  %v841_v24 = vld [vmem:[#allocation5 + $0x6e8] sm:$0xff]  ;;  %v832_v29 = vld [vmem:[#allocation5 + $0x6a0] sm:$0xff] }
 0x255   :  { %v2701_v41 = vpack.c.bf16 %v779_v33, %v771_v32  ;;  %v835_v25 = vld [vmem:[#allocation5 + $0x6b8] sm:$0xff]  ;;  %v840_v30 = vld [vmem:[#allocation5 + $0x6e0] sm:$0xff]  ;;  %v834_v33 = vld [vmem:[#allocation5 + $0x6b0] sm:$0xff] }
 0x257   :  { %2620 = vmatpush1.bf16.msra.mxu0 %v2619_v44  ;;  %2684 = vmatpush1.bf16.msra.mxu1 %v2683_v43  ;;  %v778_v44 = vld [vmem:[#allocation5 + $0x4f0] sm:$0xff]  ;;  %v785_v43 = vld [vmem:[#allocation5 + $0x528] sm:$0xff] }
 0x258   :  { %2622 = vmatprep.subr.bf16.mxu0 %v2621_v47  ;;  %2686 = vmatprep.subr.bf16.mxu1 %v2685_v48  ;;  %v795_v47 = vld [vmem:[#allocation5 + $0x578] sm:$0xff]  ;;  %v2639_v48 = vpack.c.bf16 %v776_v39, %v768_v38  ;;  %v2703_v49 = vpack.c.bf16 %v778_v44, %v770_v42  ;;  %v2641_v51 = vpack.c.bf16 %v793_v45, %v785_v43  ;;  %v857_v38 = vld [vmem:[#allocation5 + $0x768] sm:$0xff]  ;;  %v848_v44 = vld [vmem:[#allocation5 + $0x720] sm:$0xff] }
 0x259   :  { %v2705_v52 = vpack.c.bf16 %v795_v47, %v787_v46  ;;  %v851_v39 = vld [vmem:[#allocation5 + $0x738] sm:$0xff]  ;;  %v856_v43 = vld [vmem:[#allocation5 + $0x760] sm:$0xff]  ;;  %v850_v47 = vld [vmem:[#allocation5 + $0x730] sm:$0xff] }
 0x25b   :  { %2624 = vmatpush1.bf16.msra.mxu0 %v2623_v55  ;;  %2688 = vmatpush1.bf16.msra.mxu1 %v2687_v56  ;;  %v794_v55 = vld [vmem:[#allocation5 + $0x570] sm:$0xff]  ;;  %v801_v56 = vld [vmem:[#allocation5 + $0x5a8] sm:$0xff] }
 0x25c   :  { %2626 = vmatprep.subr.bf16.mxu0 %v2625_v60  ;;  %2690 = vmatprep.subr.bf16.mxu1 %v2689_v61  ;;  %v811_v60 = vld [vmem:[#allocation5 + $0x5f8] sm:$0xff]  ;;  %v2643_v61 = vpack.c.bf16 %v792_v50, %v784_v57  ;;  %v2707_v62 = vpack.c.bf16 %v794_v55, %v786_v54  ;;  %v2645_v5 = vpack.c.bf16 %v809_v58, %v801_v56  ;;  %v873_v57 = vld [vmem:[#allocation5 + $0x7e8] sm:$0xff]  ;;  %v864_v55 = vld [vmem:[#allocation5 + $0x7a0] sm:$0xff] }
 0x25d   :  { %v2709_v6 = vpack.c.bf16 %v811_v60, %v803_v59  ;;  %v867_v50 = vld [vmem:[#allocation5 + $0x7b8] sm:$0xff]  ;;  %v872_v59 = vld [vmem:[#allocation5 + $0x7e0] sm:$0xff]  ;;  %v866_v60 = vld [vmem:[#allocation5 + $0x7b0] sm:$0xff] }
 0x25f   :  { %2628 = vmatpush1.bf16.msra.mxu0 %v2627_v8  ;;  %2692 = vmatpush1.bf16.msra.mxu1 %v2691_v9  ;;  %v810_v8 = vld [vmem:[#allocation5 + $0x5f0] sm:$0xff]  ;;  %v817_v9 = vld [vmem:[#allocation5 + $0x628] sm:$0xff] }
 0x260   :  { %2630 = vmatprep.subr.bf16.mxu0 %v2629_v12  ;;  %2694 = vmatprep.subr.bf16.mxu1 %v2693_v13  ;;  %v827_v12 = vld [vmem:[#allocation5 + $0x678] sm:$0xff]  ;;  %v2647_v13 = vpack.c.bf16 %v808_v4, %v800_v3  ;;  %v2711_v14 = vpack.c.bf16 %v810_v8, %v802_v7  ;;  %v2649_v19 = vpack.c.bf16 %v825_v10, %v817_v9  ;;  %v1243_v4 = vld [vmem:[%s4316_s6 + $0x8] sm:$0xff]  ;;  %v1250_v9 = vld [vmem:[%s4316_s6 + $0x40] sm:$0xff] }
 0x261   :  { %v2713_v20 = vpack.c.bf16 %v827_v12, %v819_v11  ;;  %v1253_v8 = vld [vmem:[%s4316_s6 + $0x58] sm:$0xff]  ;;  %v1244_v12 = vld [vmem:[%s4316_s6 + $0x10] sm:$0xff] }
 0x263   :  { %2632 = vmatpush1.bf16.msra.mxu0 %v2631_v22  ;;  %2696 = vmatpush1.bf16.msra.mxu1 %v2695_v23  ;;  %v826_v22 = vld [vmem:[#allocation5 + $0x670] sm:$0xff]  ;;  %v833_v23 = vld [vmem:[#allocation5 + $0x6a8] sm:$0xff] }
 0x264   :  { %2634 = vmatprep.subr.bf16.mxu0 %v2633_v26  ;;  %2698 = vmatprep.subr.bf16.mxu1 %v2697_v27  ;;  %v843_v26 = vld [vmem:[#allocation5 + $0x6f8] sm:$0xff]  ;;  %v2651_v27 = vpack.c.bf16 %v824_v18, %v816_v17  ;;  %v2715_v28 = vpack.c.bf16 %v826_v22, %v818_v21  ;;  %v2653_v31 = vpack.c.bf16 %v841_v24, %v833_v23  ;;  %v1267_v18 = vld [vmem:[%s4316_s6 + $0xc8] sm:$0xff]  ;;  %v1258_v23 = vld [vmem:[%s4316_s6 + $0x80] sm:$0xff] }
 0x265   :  { %v2717_v32 = vpack.c.bf16 %v843_v26, %v835_v25  ;;  %v1266_v24 = vld [vmem:[%s4316_s6 + $0xc0] sm:$0xff]  ;;  %v1260_v25 = vld [vmem:[%s4316_s6 + $0x90] sm:$0xff] }
 0x266   :  { %v2735_v26 = vpack.c.bf16 %v1266_v24, %v1258_v23 }
 0x267   :  { %2636 = vmatpush1.bf16.msra.mxu0 %v2635_v34  ;;  %2700 = vmatpush1.bf16.msra.mxu1 %v2699_v37  ;;  %v842_v34 = vld [vmem:[#allocation5 + $0x6f0] sm:$0xff]  ;;  %v849_v37 = vld [vmem:[#allocation5 + $0x728] sm:$0xff] }
 0x268   :  { %2638 = vmatprep.subr.bf16.mxu0 %v2637_v40  ;;  %2702 = vmatprep.subr.bf16.mxu1 %v2701_v41  ;;  %v859_v40 = vld [vmem:[#allocation5 + $0x778] sm:$0xff]  ;;  %v2655_v41 = vpack.c.bf16 %v840_v30, %v832_v29  ;;  %v2719_v42 = vpack.c.bf16 %v842_v34, %v834_v33  ;;  %v2657_v45 = vpack.c.bf16 %v857_v38, %v849_v37  ;;  %v1283_v29 = vld [vmem:[%s4316_s6 + $0x148] sm:$0xff]  ;;  %v1274_v34 = vld [vmem:[%s4316_s6 + $0x100] sm:$0xff] }
 0x269   :  { %v2721_v46 = vpack.c.bf16 %v859_v40, %v851_v39  ;;  %v1285_v33 = vld [vmem:[%s4316_s6 + $0x158] sm:$0xff]  ;;  %v1282_v38 = vld [vmem:[%s4316_s6 + $0x140] sm:$0xff]  ;;  %v1276_v39 = vld [vmem:[%s4316_s6 + $0x110] sm:$0xff] }
 0x26a   :  { %v1284_v40 = vld [vmem:[%s4316_s6 + $0x150] sm:$0xff] }
 0x26b   :  { %2640 = vmatpush1.bf16.msra.mxu0 %v2639_v48  ;;  %2704 = vmatpush1.bf16.msra.mxu1 %v2703_v49  ;;  %v858_v48 = vld [vmem:[#allocation5 + $0x770] sm:$0xff]  ;;  %v865_v49 = vld [vmem:[#allocation5 + $0x7a8] sm:$0xff] }
 0x26c   :  { %2642 = vmatprep.subr.bf16.mxu0 %v2641_v51  ;;  %2706 = vmatprep.subr.bf16.mxu1 %v2705_v52  ;;  %v875_v51 = vld [vmem:[#allocation5 + $0x7f8] sm:$0xff]  ;;  %v2659_v52 = vpack.c.bf16 %v856_v43, %v848_v44  ;;  %v2723_v54 = vpack.c.bf16 %v858_v48, %v850_v47  ;;  %v2661_v56 = vpack.c.bf16 %v873_v57, %v865_v49  ;;  %v1299_v44 = vld [vmem:[%s4316_s6 + $0x1c8] sm:$0xff]  ;;  %v1290_v48 = vld [vmem:[%s4316_s6 + $0x180] sm:$0xff] }
 0x26d   :  { %v2725_v58 = vpack.c.bf16 %v875_v51, %v867_v50  ;;  %v1293_v43 = vld [vmem:[%s4316_s6 + $0x198] sm:$0xff]  ;;  %v1298_v49 = vld [vmem:[%s4316_s6 + $0x1c0] sm:$0xff]  ;;  %v1292_v50 = vld [vmem:[%s4316_s6 + $0x190] sm:$0xff] }
 0x26e   :  { %v1301_v47 = vld [vmem:[%s4316_s6 + $0x1d8] sm:$0xff]  ;;  %v1300_v51 = vld [vmem:[%s4316_s6 + $0x1d0] sm:$0xff] }
 0x26f   :  { %2644 = vmatpush1.bf16.msra.mxu0 %v2643_v61  ;;  %2708 = vmatpush1.bf16.msra.mxu1 %v2707_v62  ;;  %v874_v61 = vld [vmem:[#allocation5 + $0x7f0] sm:$0xff]  ;;  %v2663_v62 = vpack.c.bf16 %v872_v59, %v864_v55  ;;  %v2757_v57 = vpack.c.bf16 %v1301_v47, %v1293_v43  ;;  %v878_v55 = vlaneseq  ;;  %v1247_v43 = vld [vmem:[%s4316_s6 + $0x28] sm:$0xff]  ;;  %v3097_v47 = vmov 0.0  }
 0x270   :  { %2646 = vmatprep.subr.bf16.mxu0 %v2645_v5  ;;  %2710 = vmatprep.subr.bf16.mxu1 %v2709_v6  ;;  %v2727_v3 = vpack.c.bf16 %v874_v61, %v866_v60  ;;  %v1251_v5 = vld [vmem:[%s4316_s6 + $0x48] sm:$0xff]  ;;  %v1245_v6 = vld [vmem:[%s4316_s6 + $0x18] sm:$0xff]  ;;  %v876_v60 = vld [vmem:[%s4315_s5] sm:$0xff] }
 0x271   :  { %v2729_v7 = vpack.c.bf16 %v1251_v5, %v1243_v4  ;;  %v2745_v10 = vpack.c.bf16 %v1253_v8, %v1245_v6 }
 0x273   :  { %2648 = vmatpush1.bf16.msra.mxu0 %v2647_v13  ;;  %2712 = vmatpush1.bf16.msra.mxu1 %v2711_v14  ;;  %v1252_v13 = vld [vmem:[%s4316_s6 + $0x50] sm:$0xff]  ;;  %v1259_v14 = vld [vmem:[%s4316_s6 + $0x88] sm:$0xff] }
 0x274   :  { %2650 = vmatprep.subr.bf16.mxu0 %v2649_v19  ;;  %2714 = vmatprep.subr.bf16.mxu1 %v2713_v20  ;;  %v2747_v17 = vpack.c.bf16 %v1252_v13, %v1244_v12  ;;  %v1261_v19 = vld [vmem:[%s4316_s6 + $0x98] sm:$0xff]  ;;  %v2733_v21 = vpack.c.bf16 %v1267_v18, %v1259_v14 }
 0x275   :  { %v1269_v20 = vld [vmem:[%s4316_s6 + $0xd8] sm:$0xff] }
 0x276   :  { %v2749_v22 = vpack.c.bf16 %v1269_v20, %v1261_v19 }
 0x277   :  { %2652 = vmatpush1.bf16.msra.mxu0 %v2651_v27  ;;  %2716 = vmatpush1.bf16.msra.mxu1 %v2715_v28  ;;  %v1268_v27 = vld [vmem:[%s4316_s6 + $0xd0] sm:$0xff]  ;;  %v1275_v28 = vld [vmem:[%s4316_s6 + $0x108] sm:$0xff] }
 0x278   :  { %2654 = vmatprep.subr.bf16.mxu0 %v2653_v31  ;;  %2718 = vmatprep.subr.bf16.mxu1 %v2717_v32  ;;  %v2751_v30 = vpack.c.bf16 %v1268_v27, %v1260_v25  ;;  %v2737_v31 = vpack.c.bf16 %v1283_v29, %v1275_v28  ;;  %v1277_v32 = vld [vmem:[%s4316_s6 + $0x118] sm:$0xff] }
 0x279   :  { %v2753_v37 = vpack.c.bf16 %v1285_v33, %v1277_v32 }
 0x27b   :  { %2656 = vmatpush1.bf16.msra.mxu0 %v2655_v41  ;;  %2720 = vmatpush1.bf16.msra.mxu1 %v2719_v42  ;;  %v2739_v41 = vpack.c.bf16 %v1282_v38, %v1274_v34  ;;  %v1291_v42 = vld [vmem:[%s4316_s6 + $0x188] sm:$0xff] }
 0x27c   :  { %2658 = vmatprep.subr.bf16.mxu0 %v2657_v45  ;;  %2722 = vmatprep.subr.bf16.mxu1 %v2721_v46  ;;  %v2755_v45 = vpack.c.bf16 %v1284_v40, %v1276_v39  ;;  %v2741_v46 = vpack.c.bf16 %v1299_v44, %v1291_v42 }
 0x27f   :  { %2660 = vmatpush1.bf16.msra.mxu0 %v2659_v52  ;;  %2724 = vmatpush1.bf16.msra.mxu1 %v2723_v54  ;;  %v2743_v52 = vpack.c.bf16 %v1298_v49, %v1290_v48  ;;  %v2759_v54 = vpack.c.bf16 %v1300_v51, %v1292_v50  ;;  %v1257_v49 = vld [vmem:[%s4316_s6 + $0x78] sm:$0xff] }
 0x280   :  { %2662 = vmatprep.subr.bf16.mxu0 %v2661_v56  ;;  %2726 = vmatprep.subr.bf16.mxu1 %v2725_v58  ;;  %v879_v56 = vshrl.u32 %v878_v55, 7 }
 0x282   :  { %v880_v58 = vsub.s32 0, %v879_v56  ;;  %v888_v59 = vsub.s32 2, %v879_v56  ;;  %v884_v61 = vsub.s32 1, %v879_v56  ;;  %v904_v27 = vsub.s32 6, %v879_v56 }
 0x283   :  { %2664 = vmatpush1.bf16.msra.mxu0 %v2663_v62  ;;  %2728 = vmatpush1.bf16.msra.mxu1 %v2727_v3  ;;  %v892_v62 = vsub.s32 3, %v879_v56  ;;  %v900_v28 = vsub.s32 5, %v879_v56  ;;  %v908_v29 = vsub.s32 7, %v879_v56 }
 0x284   :  { %2730 = vmatprep.subr.bf16.mxu0 %v2729_v7  ;;  %2746 = vmatprep.subr.bf16.mxu1 %v2745_v10  ;;  %v881_v3 = vrot.slane %v876_v60, %v880_v58  ;;  %v889_v4 = vrot.slane %v876_v60, %v888_v59  ;;  %v885_v5 = vrot.slane %v876_v60, %v884_v61 }
 0x285   :  { %v893_v6 = vrot.slane %v876_v60, %v892_v62  ;;  %v901_v32 = vrot.slane %v876_v60, %v900_v28  ;;  %v909_v33 = vrot.slane %v876_v60, %v908_v29  ;;  %v1279_v28 = vld [vmem:[%s4316_s6 + $0x128] sm:$0xff] }
 0x286   :  { %1125 = vmatmul.mubr.f32.vlgmr.msra.gmra.mrb[6].mxu0 %v3613_v53  ;;  %1196 = vmatmul.mubr.f32.vlgmr.msra.gmra.mrb[6].mxu1 %v3613_v53  ;;  %v1242_v53 = vld [vmem:[%s4316_s6] sm:$0xff] }
 0x287   :  { %v2731_v11 = vpack.c.bf16 %v1250_v9, %v1242_v53  ;;  %2748 = vmatpush1.bf16.msra.mxu1 %v2747_v17  ;;  %1373 = vmatprep.mubr.f32.mxu0 %v3097_v47 }
 0x288   :  { %2750 = vmatprep.subr.bf16.mxu1 %v2749_v22  ;;  %1444 = vmatprep.mubr.f32.mxu1 %v3097_v47 }
 0x289   :  { %2732 = vmatpush1.bf16.msra.mxu0 %v2731_v11 }
 0x28a   :  { %2734 = vmatprep.subr.bf16.mxu0 %v2733_v21 }
 0x28b   :  { %2752 = vmatpush1.bf16.msra.mxu1 %v2751_v30 }
 0x28c   :  { %2754 = vmatprep.subr.bf16.mxu1 %v2753_v37 }
 0x28d   :  { %2736 = vmatpush1.bf16.msra.mxu0 %v2735_v26  ;;  %v896_v26 = vsub.s32 4, %v879_v56 }
 0x28e   :  { %2738 = vmatprep.subr.bf16.mxu0 %v2737_v31  ;;  %v905_v31 = vrot.slane %v876_v60, %v904_v27  ;;  %v1272_v27 = vld [vmem:[%s4316_s6 + $0xf0] sm:$0xff] }
 0x28f   :  { %2756 = vmatpush1.bf16.msra.mxu1 %v2755_v45  ;;  %v897_v30 = vrot.slane %v876_v60, %v896_v26  ;;  %v1255_v45 = vld [vmem:[%s4316_s6 + $0x68] sm:$0xff]  ;;  %v1264_v26 = vld [vmem:[%s4316_s6 + $0xb0] sm:$0xff] }
 0x290   :  { %2758 = vmatprep.subr.bf16.mxu1 %v2757_v57  ;;  %v2761_v48 = vpack.c.bf16 %v1255_v45, %v1247_v43  ;;  %v1303_v43 = vld [vmem:[%s4316_s6 + $0x1e8] sm:$0xff]  ;;  %v1297_v45 = vld [vmem:[%s4316_s6 + $0x1b8] sm:$0xff] }
 0x291   :  { %2740 = vmatpush1.bf16.msra.mxu0 %v2739_v41 }
 0x292   :  { %2742 = vmatprep.subr.bf16.mxu0 %v2741_v46  ;;  %v1249_v46 = vld [vmem:[%s4316_s6 + $0x38] sm:$0xff] }
 0x293   :  { %2760 = vmatpush1.bf16.msra.mxu1 %v2759_v54  ;;  %v2777_v50 = vpack.c.bf16 %v1257_v49, %v1249_v46  ;;  %v1305_v46 = vld [vmem:[%s4316_s6 + $0x1f8] sm:$0xff] }
 0x295   :  { %2744 = vmatpush1.bf16.msra.mxu0 %v2743_v52  ;;  %2778 = vmatprep.subr.bf16.mxu1 %v2777_v50 }
 0x296   :  { %2762 = vmatprep.subr.bf16.mxu0 %v2761_v48 }
 0x319   :  { %v984_v7 = vpop.f32.mrb[4].mxu0  ;;  %v1055_v8 = vpop.f32.mrb[4].mxu1 }
 0x31a   :  { %v985_v53 = vadd.f32 %v984_v7, %v881_v3  ;;  %v1056_v9 = vadd.f32 %v1055_v8, %v889_v4  ;;  %v986_v10 = vpop.f32.mrb[5].mxu0  ;;  %v1057_v11 = vpop.f32.mrb[5].mxu1  ;;  %v1254_v7 = vld [vmem:[%s4316_s6 + $0x60] sm:$0xff]  ;;  %v1248_v8 = vld [vmem:[%s4316_s6 + $0x30] sm:$0xff] }
 0x31b   :  { %v987_v12 = vadd.f32 %v986_v10, %v885_v5  ;;  %v1058_v13 = vadd.f32 %v1057_v11, %v893_v6  ;;  %v1246_v6 = vld [vmem:[%s4316_s6 + $0x20] sm:$0xff]  ;;  %v1271_v10 = vld [vmem:[%s4316_s6 + $0xe8] sm:$0xff]  ;;  %v1265_v11 = vld [vmem:[%s4316_s6 + $0xb8] sm:$0xff] }
 0x31c   :  { %2938 = vlog2.f32 %v985_v53  ;;  %v1256_v53 = vld [vmem:[%s4316_s6 + $0x70] sm:$0xff] }
 0x31d   :  { %2940 = vlog2.f32 %v1056_v9  ;;  %v1263_v9 = vld [vmem:[%s4316_s6 + $0xa8] sm:$0xff] }
 0x31e   :  { %2942 = vlog2.f32 %v987_v12  ;;  %v1273_v12 = vld [vmem:[%s4316_s6 + $0xf8] sm:$0xff] }
 0x31f   :  { %2944 = vlog2.f32 %v1058_v13 }
 0x326   :  { %v2939_v14 = vpop.eup %2938 }
 0x327   :  { %v2941_v17 = vpop.eup %2940  ;;  %v1203_v18 = vmul.f32 0.6931472, %v2939_v14 }
 0x328   :  { %v2943_v19 = vpop.eup %2942  ;;  %v1207_v20 = vmul.f32 0.6931472, %v2941_v17 }
 0x329   :  { %v2945_v21 = vpop.eup %2944  ;;  %v1205_v22 = vmul.f32 0.6931472, %v2943_v19  ;;  %v2779_v19 = vpack.c.bf16 %v1256_v53, %v1248_v8  ;;  %v1659_v8 = vld [vmem:[%s4317_s7 + $0x108] sm:$0xff]  ;;  %v1644_v53 = vld [vmem:[%s4317_s7 + $0x90] sm:$0xff] }
 0x32a   :  { %v1218_v23 = vadd.f32 %v1207_v20, %v1203_v18  ;;  %v1209_v24 = vmul.f32 0.6931472, %v2945_v21  ;;  %v2763_v18 = vpack.c.bf16 %v1254_v7, %v1246_v6  ;;  %v1262_v20 = vld [vmem:[%s4316_s6 + $0xa0] sm:$0xff] }
 0x32b   :  { %v1270_v21 = vld [vmem:[%s4316_s6 + $0xe0] sm:$0xff] }
 0x32c   :  { %v1219_v25 = vadd.f32 %v1209_v24, %v1205_v22  ;;  %v2765_v24 = vpack.c.bf16 %v1271_v10, %v1263_v9  ;;  %v1658_v7 = vld [vmem:[%s4317_s7 + $0x100] sm:$0xff]  ;;  %v1645_v10 = vld [vmem:[%s4317_s7 + $0x98] sm:$0xff] }
 0x32d   :  { %v2827_v9 = vpack.c.bf16 %v1659_v8, %v1658_v7  ;;  %v3958_v7 = vmul.f32 5.0, %v3606_v36 }
 0x32f   :  { %vm106_vm11 = vcmp.gt.f32.partialorder %v3958_v7, 20.0 }
 0x359   :  { %v1126_v34 = vpop.f32.mrb[6].mxu0  ;;  %v1197_v37 = vpop.f32.mrb[6].mxu1 }
 0x35a   :  { %v1127_v38 = vadd.f32 %v1126_v34, %v897_v30  ;;  %v1198_v39 = vadd.f32 %v1197_v37, %v905_v31  ;;  %v1128_v40 = vpop.f32.mrb[7].mxu0  ;;  %v1199_v41 = vpop.f32.mrb[7].mxu1  ;;  %v1287_v30 = vld [vmem:[%s4316_s6 + $0x168] sm:$0xff]  ;;  %v1281_v31 = vld [vmem:[%s4316_s6 + $0x138] sm:$0xff]  ;;  %v2783_v34 = vpack.c.bf16 %v1272_v27, %v1264_v26  ;;  %v1278_v37 = vld [vmem:[%s4316_s6 + $0x120] sm:$0xff] }
 0x35b   :  { %v1129_v42 = vadd.f32 %v1128_v40, %v901_v32  ;;  %v1200_v44 = vadd.f32 %v1199_v41, %v909_v33  ;;  %v1289_v32 = vld [vmem:[%s4316_s6 + $0x178] sm:$0xff]  ;;  %v2767_v33 = vpack.c.bf16 %v1270_v21, %v1262_v20  ;;  %v1280_v41 = vld [vmem:[%s4316_s6 + $0x130] sm:$0xff]  ;;  %v1678_v26 = vld [vmem:[%s4317_s7 + $0x1a0] sm:$0xff] }
 0x35c   :  { %2946 = vlog2.f32 %v1127_v38  ;;  %v1286_v38 = vld [vmem:[%s4316_s6 + $0x160] sm:$0xff]  ;;  %v2785_v40 = vpack.c.bf16 %v1289_v32, %v1281_v31  ;;  %v1661_v21 = vld [vmem:[%s4317_s7 + $0x118] sm:$0xff]  ;;  %v1679_v27 = vld [vmem:[%s4317_s7 + $0x1a8] sm:$0xff] }
 0x35d   :  { %2948 = vlog2.f32 %v1198_v39  ;;  %v2769_v39 = vpack.c.bf16 %v1287_v30, %v1279_v28  ;;  %v2771_v48 = vpack.c.bf16 %v1286_v38, %v1278_v37  ;;  %v1630_v28 = vld [vmem:[%s4317_s7 + $0x20] sm:$0xff]  ;;  %v1631_v30 = vld [vmem:[%s4317_s7 + $0x28] sm:$0xff]  ;;  %v1649_v37 = vld [vmem:[%s4317_s7 + $0xb8] sm:$0xff] }
 0x35e   :  { %2950 = vlog2.f32 %v1129_v42  ;;  %v1288_v42 = vld [vmem:[%s4316_s6 + $0x170] sm:$0xff]  ;;  %v1662_v31 = vld [vmem:[%s4317_s7 + $0x120] sm:$0xff]  ;;  %v1663_v32 = vld [vmem:[%s4317_s7 + $0x128] sm:$0xff] }
 0x35f   :  { %2952 = vlog2.f32 %v1200_v44  ;;  %v1295_v44 = vld [vmem:[%s4316_s6 + $0x1a8] sm:$0xff]  ;;  %v2787_v49 = vpack.c.bf16 %v1288_v42, %v1280_v41  ;;  %v1680_v38 = vld [vmem:[%s4317_s7 + $0x1b0] sm:$0xff]  ;;  %v1681_v41 = vld [vmem:[%s4317_s7 + $0x1b8] sm:$0xff] }
 0x360   :  { %v2773_v50 = vpack.c.bf16 %v1303_v43, %v1295_v44  ;;  %v1632_v42 = vld [vmem:[%s4317_s7 + $0x30] sm:$0xff]  ;;  %v1633_v44 = vld [vmem:[%s4317_s7 + $0x38] sm:$0xff]  ;;  %v2837_v43 = vpack.c.bf16 %v1681_v41, %v1680_v38 }
 0x366   :  { %v2947_v57 = vpop.eup %2946 }
 0x367   :  { %v2949_v51 = vpop.eup %2948  ;;  %v1211_v52 = vmul.f32 0.6931472, %v2947_v57  ;;  %v1294_v57 = vld [vmem:[%s4316_s6 + $0x1a0] sm:$0xff] }
 0x368   :  { %v2951_v54 = vpop.eup %2950  ;;  %v1215_v56 = vmul.f32 0.6931472, %v2949_v51  ;;  %v2789_v51 = vpack.c.bf16 %v1305_v46, %v1297_v45  ;;  %v1664_v45 = vld [vmem:[%s4317_s7 + $0x130] sm:$0xff]  ;;  %v1665_v46 = vld [vmem:[%s4317_s7 + $0x138] sm:$0xff] }
 0x369   :  { %v2953_v55 = vpop.eup %2952  ;;  %v1213_v58 = vmul.f32 0.6931472, %v2951_v54  ;;  %v1220_v59 = vadd.f32 %v1218_v23, %v1211_v52  ;;  %v1302_v52 = vld [vmem:[%s4316_s6 + $0x1e0] sm:$0xff]  ;;  %v1304_v54 = vld [vmem:[%s4316_s6 + $0x1f0] sm:$0xff] }
 0x36a   :  { %v1217_v60 = vmul.f32 0.6931472, %v2953_v55  ;;  %v2775_v55 = vpack.c.bf16 %v1302_v52, %v1294_v57  ;;  %v1682_v57 = vld [vmem:[%s4317_s7 + $0x1c0] sm:$0xff]  ;;  %v2839_v52 = vpack.c.bf16 %v1665_v46, %v1664_v45 }
 0x36b   :  { %v1222_v61 = vadd.f32 %v1220_v59, %v1215_v56  ;;  %v1221_v62 = vadd.f32 %v1219_v25, %v1213_v58  ;;  %v2781_v25 = vpack.c.bf16 %v1273_v12, %v1265_v11  ;;  %v1642_v58 = vld [vmem:[%s4317_s7 + $0x80] sm:$0xff]  ;;  %v1643_v59 = vld [vmem:[%s4317_s7 + $0x88] sm:$0xff]  ;;  %v1676_v11 = vld [vmem:[%s4317_s7 + $0x190] sm:$0xff] }
 0x36c   :  { %v1677_v12 = vld [vmem:[%s4317_s7 + $0x198] sm:$0xff] }
 0x36d   :  { %v1225_v3 = vrot.slane %v1222_v61, 6  ;;  %v1223_v4 = vadd.f32 %v1221_v62, %v1217_v60  ;;  %v1674_v60 = vld [vmem:[%s4317_s7 + $0x180] sm:$0xff]  ;;  %v1675_v62 = vld [vmem:[%s4317_s7 + $0x188] sm:$0xff] }
 0x36f   :  { %1226 = vrot.lane.b32.xlu1 %v1225_v3, %s3095_s27  ;;  %v1232_v5 = vrot.slane %v1223_v4, 2  ;;  %v1230_v13 = vrot.slane %v1223_v4, 4  ;;  %v1626_v3 = vld [vmem:[%s4317_s7] sm:$0xff]  ;;  %v1627_v4 = vld [vmem:[%s4317_s7 + $0x8] sm:$0xff] }
 0x370   :  { %v2795_v6 = vpack.c.bf16 %v1627_v4, %v1626_v3  ;;  %v3949_v4 = vmul.f32 5.0, %v3461_v15 }
 0x371   :  { %1233 = vrot.lane.b32.xlu0 %v1232_v5, %s3095_s27  ;;  %v2825_v5 = vpack.c.bf16 %v1675_v62, %v1674_v60 }
 0x372   :  { %v118_v8 = vmul.f32 1.442695, %v3949_v4  ;;  %vm105_vm9 = vcmp.gt.f32.partialorder %v3949_v4, 20.0 }
 0x3e1   :  { %v1227_v14 = vpop.permute.xlu1 %1226 }
 0x3e2   :  { %v1237_v17 = vsel %vm1236_vm2, %v1222_v61, %v1227_v14  ;;  %v2793_v61 = vpack.c.bf16 %v1643_v59, %v1642_v58  ;;  %v2829_v14 = vpack.c.bf16 %v1677_v12, %v1676_v11  ;;  %v3939_v58 = vmul.f32 5.0, %v3428_v2 }
 0x3e3   :  { %v1234_v22 = vpop.permute.xlu0 %1233  ;;  %v1239_v23 = vsel %vm1238_vm3, %v1237_v17, %v1230_v13  ;;  %v2797_v13 = vpack.c.bf16 %v1645_v10, %v1644_v53  ;;  %v1628_v17 = vld [vmem:[%s4317_s7 + $0x10] sm:$0xff]  ;;  %v3942_v59 = vmul.f32 5.0, %v3422_v0 }
 0x3e4   :  { %v1241_v29 = vsel %vm1240_vm4, %v1239_v23, %v1234_v22  ;;  %v1646_v22 = vld [vmem:[%s4317_s7 + $0xa0] sm:$0xff]  ;;  %v1647_v23 = vld [vmem:[%s4317_s7 + $0xa8] sm:$0xff]  ;;  %v112_v62 = vmul.f32 1.442695, %v3939_v58  ;;  %vm102_vm7 = vcmp.gt.f32.partialorder %v3939_v58, 20.0 }
 0x3e5   :  { %2061 = vmatmul.mubr.msk.f32.vlgmr.msra.gmra.mrb[8].mxu0 %vm617_vm1, %v1241_v29  ;;  %2062 = vmatmul.mubr.msk.f32.vlgmr.msra.gmra.mrb[8].mxu1 %vm617_vm1, %v1241_v29  ;;  %v114_v3 = vmul.f32 1.442695, %v3942_v59  ;;  %vm103_vm8 = vcmp.gt.f32.partialorder %v3942_v59, 20.0 }
 0x3e6   :  { %2764 = vmatpush1.bf16.msra.mxu0 %v2763_v18  ;;  %2780 = vmatpush1.bf16.msra.mxu1 %v2779_v19  ;;  %v1629_v18 = vld [vmem:[%s4317_s7 + $0x18] sm:$0xff]  ;;  %v1660_v19 = vld [vmem:[%s4317_s7 + $0x110] sm:$0xff] }
 0x3e7   :  { %2766 = vmatprep.subr.bf16.mxu0 %v2765_v24  ;;  %2782 = vmatprep.subr.bf16.mxu1 %v2781_v25  ;;  %v2799_v20 = vpack.c.bf16 %v1629_v18, %v1628_v17  ;;  %v2831_v24 = vpack.c.bf16 %v1661_v21, %v1660_v19  ;;  %v2801_v25 = vpack.c.bf16 %v1647_v23, %v1646_v22 }
 0x3e8   :  { %1515 = vmatprep.mubr.f32.mxu0 %v3097_v47  ;;  %1586 = vmatprep.mubr.f32.mxu1 %v3097_v47  ;;  %v1296_v47 = vld [vmem:[%s4316_s6 + $0x1b0] sm:$0xff] }
 0x3e9   :  { %v2791_v56 = vpack.c.bf16 %v1304_v54, %v1296_v47 }
 0x3ea   :  { %2768 = vmatpush1.bf16.msra.mxu0 %v2767_v33  ;;  %2784 = vmatpush1.bf16.msra.mxu1 %v2783_v34  ;;  %v2803_v33 = vpack.c.bf16 %v1631_v30, %v1630_v28  ;;  %v1648_v34 = vld [vmem:[%s4317_s7 + $0xb0] sm:$0xff] }
 0x3eb   :  { %2770 = vmatprep.subr.bf16.mxu0 %v2769_v39  ;;  %2786 = vmatprep.subr.bf16.mxu1 %v2785_v40  ;;  %v2835_v39 = vpack.c.bf16 %v1663_v32, %v1662_v31  ;;  %v2805_v40 = vpack.c.bf16 %v1649_v37, %v1648_v34 }
 0x3ee   :  { %2772 = vmatpush1.bf16.msra.mxu0 %v2771_v48  ;;  %2788 = vmatpush1.bf16.msra.mxu1 %v2787_v49  ;;  %v1650_v48 = vld [vmem:[%s4317_s7 + $0xc0] sm:$0xff]  ;;  %v1651_v49 = vld [vmem:[%s4317_s7 + $0xc8] sm:$0xff] }
 0x3ef   :  { %2774 = vmatprep.subr.bf16.mxu0 %v2773_v50  ;;  %2790 = vmatprep.subr.bf16.mxu1 %v2789_v51  ;;  %v1683_v50 = vld [vmem:[%s4317_s7 + $0x1c8] sm:$0xff]  ;;  %v2807_v51 = vpack.c.bf16 %v1633_v44, %v1632_v42  ;;  %v2809_v47 = vpack.c.bf16 %v1651_v49, %v1650_v48 }
 0x3f0   :  { %v2841_v54 = vpack.c.bf16 %v1683_v50, %v1682_v57 }
 0x3f2   :  { %2776 = vmatpush1.bf16.msra.mxu0 %v2775_v55  ;;  %2792 = vmatpush1.bf16.msra.mxu1 %v2791_v56  ;;  %v3933_v55 = vmul.f32 5.0, %v3419_v63  ;;  %v3936_v56 = vmul.f32 5.0, %v3425_v1 }
 0x3f3   :  { %2794 = vmatprep.subr.bf16.mxu0 %v2793_v61  ;;  %2826 = vmatprep.subr.bf16.mxu1 %v2825_v5  ;;  %v3952_v5 = vmul.f32 5.0, %v3464_v16 }
 0x3f4   :  { %v110_v60 = vmul.f32 1.442695, %v3933_v55  ;;  %v108_v61 = vmul.f32 1.442695, %v3936_v56  ;;  %vm101_vm5 = vcmp.gt.f32.partialorder %v3933_v55, 20.0  ;;  %vm100_vm6 = vcmp.gt.f32.partialorder %v3936_v56, 20.0 }
 0x3f5   :  { %2063 = vmatmul.mubr.msk.f32.vlgmr.msra.gmra.mrb[10].mxu0 %vm617_vm1, %v1241_v29  ;;  %2064 = vmatmul.mubr.msk.f32.vlgmr.msra.gmra.mrb[10].mxu1 %vm617_vm1, %v1241_v29  ;;  %v2833_v29 = vpack.c.bf16 %v1679_v27, %v1678_v26  ;;  %vm107_vm12 = vcmp.gt.f32.partialorder %v3952_v5, 20.0 }
 0x3f6   :  { %2796 = vmatpush3.bf16.msra.mxu0 %v2795_v6  ;;  %2828 = vmatpush3.bf16.msra.mxu1 %v2827_v9  ;;  %2954 = vpow2.f32 %v110_v60  ;;  %v3955_v6 = vmul.f32 5.0, %v3603_v35  ;;  %v122_v9 = vmul.f32 1.442695, %v3952_v5 }
 0x3f7   :  { %2798 = vmatprep.subr.bf16.mxu0 %v2797_v13  ;;  %2830 = vmatprep.subr.bf16.mxu1 %v2829_v14  ;;  %2956 = vpow2.f32 %v108_v61  ;;  %v120_v13 = vmul.f32 1.442695, %v3958_v7 }
 0x3f8   :  { %2958 = vpow2.f32 %v112_v62  ;;  %v116_v11 = vmul.f32 1.442695, %v3955_v6  ;;  %vm104_vm10 = vcmp.gt.f32.partialorder %v3955_v6, 20.0 }
 0x3f9   :  { %2960 = vpow2.f32 %v114_v3 }
 0x3fa   :  { %2800 = vmatpush3.bf16.msra.mxu0 %v2799_v20  ;;  %2832 = vmatpush3.bf16.msra.mxu1 %v2831_v24  ;;  %2962 = vpow2.f32 %v118_v8 }
 0x3fb   :  { %2802 = vmatprep.subr.bf16.mxu0 %v2801_v25  ;;  %2834 = vmatprep.subr.bf16.mxu1 %v2833_v29  ;;  %2964 = vpow2.f32 %v122_v9 }
 0x3fc   :  { %2966 = vpow2.f32 %v116_v11 }
 0x3fd   :  { %2968 = vpow2.f32 %v120_v13 }
 0x3fe   :  { %2804 = vmatpush3.bf16.msra.mxu0 %v2803_v33  ;;  %2836 = vmatpush3.bf16.msra.mxu1 %v2835_v39 }
 0x3ff   :  { %2806 = vmatprep.subr.bf16.mxu0 %v2805_v40  ;;  %2838 = vmatprep.subr.bf16.mxu1 %v2837_v43 }
 0x400   :  { %v2955_v53 = vpop.eup %2954 }
 0x401   :  { %v2957_v10 = vpop.eup %2956  ;;  %v125_v17 = vadd.f32 1.0, %v2955_v53 }
 0x402   :  { %2808 = vmatpush3.bf16.msra.mxu0 %v2807_v51  ;;  %2840 = vmatpush3.bf16.msra.mxu1 %v2839_v52  ;;  %v2959_v12 = vpop.eup %2958  ;;  %v124_v18 = vadd.f32 1.0, %v2957_v10 }
 0x403   :  { %2810 = vmatprep.subr.bf16.mxu0 %v2809_v47  ;;  %2842 = vmatprep.subr.bf16.mxu1 %v2841_v54  ;;  %v2961_v14 = vpop.eup %2960  ;;  %v126_v19 = vadd.f32 1.0, %v2959_v12  ;;  %2970 = vlog2.f32 %v125_v17 }
 0x404   :  { %v127_v20 = vadd.f32 1.0, %v2961_v14  ;;  %2972 = vlog2.f32 %v124_v18  ;;  %v2963_v21 = vpop.eup %2962 }
 0x405   :  { %2974 = vlog2.f32 %v126_v19  ;;  %v2965_v22 = vpop.eup %2964  ;;  %v129_v28 = vadd.f32 1.0, %v2963_v21 }
 0x406   :  { %2976 = vlog2.f32 %v127_v20  ;;  %v2967_v23 = vpop.eup %2966  ;;  %v131_v34 = vadd.f32 1.0, %v2965_v22 }
 0x407   :  { %v2969_v24 = vpop.eup %2968  ;;  %v128_v31 = vadd.f32 1.0, %v2967_v23  ;;  %2978 = vlog2.f32 %v129_v28 }
 0x408   :  { %v130_v33 = vadd.f32 1.0, %v2969_v24 }
 0x409   :  { %2980 = vlog2.f32 %v128_v31 }
 0x40a   :  { %2982 = vlog2.f32 %v130_v33 }
 0x40b   :  { %2984 = vlog2.f32 %v131_v34 }
 0x40d   :  { %v2971_v25 = vpop.eup %2970 }
 0x40e   :  { %v2973_v26 = vpop.eup %2972  ;;  %v135_v30 = vmul.f32 0.6931472, %v2971_v25 }
 0x40f   :  { %v2975_v27 = vpop.eup %2974  ;;  %v133_v32 = vmul.f32 0.6931472, %v2973_v26 }
 0x410   :  { %v2977_v29 = vpop.eup %2976  ;;  %v137_v37 = vmul.f32 0.6931472, %v2975_v27  ;;  %v150_v39 = vmul.f32 0.2, %v135_v30 }
 0x411   :  { %v139_v38 = vmul.f32 0.6931472, %v2977_v29  ;;  %v149_v40 = vmul.f32 0.2, %v133_v32  ;;  %v2979_v57 = vpop.eup %2978 }
 0x412   :  { %v151_v41 = vmul.f32 0.2, %v137_v37  ;;  %v158_v44 = vsel %vm101_vm5, %v3419_v63, %v150_v39  ;;  %v143_v63 = vmul.f32 0.6931472, %v2979_v57 }
 0x413   :  { %v152_v42 = vmul.f32 0.2, %v139_v38  ;;  %v157_v43 = vsel %vm100_vm6, %v3425_v1, %v149_v40  ;;  %v166_v46 = vadd.f32 1e-06, %v158_v44  ;;  %v2981_v51 = vpop.eup %2980 }
 0x414   :  { %v159_v45 = vsel %vm102_vm7, %v3428_v2, %v151_v41  ;;  %v165_v49 = vadd.f32 1e-06, %v157_v43  ;;  %v2983_v47 = vpop.eup %2982  ;;  %v141_v1 = vmul.f32 0.6931472, %v2981_v51  ;;  %v154_v56 = vmul.f32 0.2, %v143_v63 }
 0x415   :  { %v160_v48 = vsel %vm103_vm8, %v3422_v0, %v152_v42  ;;  %v167_v50 = vadd.f32 1e-06, %v159_v45  ;;  %2986 = vlog2.f32 %v166_v46  ;;  %v2985_v54 = vpop.eup %2984  ;;  %v145_v55 = vmul.f32 0.6931472, %v2983_v47  ;;  %v1634_v46 = vld [vmem:[%s4317_s7 + $0x40] sm:$0xff]  ;;  %v1653_v47 = vld [vmem:[%s4317_s7 + $0xd8] sm:$0xff] }
 0x416   :  { %v168_v52 = vadd.f32 1e-06, %v160_v48  ;;  %2988 = vlog2.f32 %v165_v49  ;;  %v147_v2 = vmul.f32 0.6931472, %v2985_v54  ;;  %v153_v58 = vmul.f32 0.2, %v141_v1 }
 0x417   :  { %2990 = vlog2.f32 %v167_v50  ;;  %v155_v59 = vmul.f32 0.2, %v145_v55  ;;  %v162_v60 = vsel %vm105_vm9, %v3461_v15, %v154_v56  ;;  %v1635_v48 = vld [vmem:[%s4317_s7 + $0x48] sm:$0xff]  ;;  %v1666_v49 = vld [vmem:[%s4317_s7 + $0x140] sm:$0xff]  ;;  %v1684_v54 = vld [vmem:[%s4317_s7 + $0x1d0] sm:$0xff] }
 0x418   :  { %2992 = vlog2.f32 %v168_v52  ;;  %v156_v0 = vmul.f32 0.2, %v147_v2  ;;  %v161_v62 = vsel %vm104_vm10, %v3603_v35, %v153_v58  ;;  %v170_v9 = vadd.f32 1e-06, %v162_v60  ;;  %v1667_v50 = vld [vmem:[%s4317_s7 + $0x148] sm:$0xff]  ;;  %v1652_v52 = vld [vmem:[%s4317_s7 + $0xd0] sm:$0xff] }
 0x419   :  { %v163_v8 = vsel %vm106_vm11, %v3606_v36, %v155_v59  ;;  %v169_v11 = vadd.f32 1e-06, %v161_v62  ;;  %v2811_v57 = vpack.c.bf16 %v1635_v48, %v1634_v46  ;;  %v2843_v51 = vpack.c.bf16 %v1667_v50, %v1666_v49  ;;  %v1685_v1 = vld [vmem:[%s4317_s7 + $0x1d8] sm:$0xff]  ;;  %v1636_v55 = vld [vmem:[%s4317_s7 + $0x50] sm:$0xff]  ;;  %v1655_v62 = vld [vmem:[%s4317_s7 + $0xe8] sm:$0xff] }
 0x41a   :  { %v164_v10 = vsel %vm107_vm12, %v3464_v16, %v156_v0  ;;  %v171_v12 = vadd.f32 1e-06, %v163_v8  ;;  %2994 = vlog2.f32 %v170_v9  ;;  %v2813_v63 = vpack.c.bf16 %v1653_v47, %v1652_v52  ;;  %v1637_v2 = vld [vmem:[%s4317_s7 + $0x58] sm:$0xff]  ;;  %v1668_v59 = vld [vmem:[%s4317_s7 + $0x150] sm:$0xff]  ;;  %v1638_v9 = vld [vmem:[%s4317_s7 + $0x60] sm:$0xff] }
 0x41b   :  { %v172_v15 = vadd.f32 1e-06, %v164_v10  ;;  %2996 = vlog2.f32 %v169_v11  ;;  %2812 = vmatpush3.bf16.msra.mxu0 %v2811_v57  ;;  %2844 = vmatpush3.bf16.msra.mxu1 %v2843_v51  ;;  %v2845_v56 = vpack.c.bf16 %v1685_v1, %v1684_v54  ;;  %v2815_v58 = vpack.c.bf16 %v1637_v2, %v1636_v55  ;;  %v1669_v0 = vld [vmem:[%s4317_s7 + $0x158] sm:$0xff]  ;;  %v1639_v10 = vld [vmem:[%s4317_s7 + $0x68] sm:$0xff]  ;;  %v1722_v57 = vld [vmem:[%s4317_s7 + $0x300] sm:$0xff] }
 0x41c   :  { %2998 = vlog2.f32 %v171_v12  ;;  %2814 = vmatprep.subr.bf16.mxu0 %v2813_v63  ;;  %v2847_v60 = vpack.c.bf16 %v1669_v0, %v1668_v59  ;;  %v2819_v11 = vpack.c.bf16 %v1639_v10, %v1638_v9  ;;  %v1670_v12 = vld [vmem:[%s4317_s7 + $0x160] sm:$0xff]  ;;  %v1723_v50 = vld [vmem:[%s4317_s7 + $0x308] sm:$0xff]  ;;  %v1740_v47 = vld [vmem:[%s4317_s7 + $0x390] sm:$0xff] }
 0x41d   :  { %3000 = vlog2.f32 %v172_v15  ;;  %2846 = vmatprep.subr.bf16.mxu1 %v2845_v56  ;;  %v1741_v54 = vld [vmem:[%s4317_s7 + $0x398] sm:$0xff]  ;;  %v1692_v55 = vld [vmem:[%s4317_s7 + $0x210] sm:$0xff]  ;;  %v1710_v59 = vld [vmem:[%s4317_s7 + $0x2a0] sm:$0xff] }
 0x41e   :  { %v1693_v2 = vld [vmem:[%s4317_s7 + $0x218] sm:$0xff]  ;;  %v1711_v0 = vld [vmem:[%s4317_s7 + $0x2a8] sm:$0xff] }
 0x41f   :  { %v2987_v61 = vpop.eup %2986  ;;  %2816 = vmatpush3.bf16.msra.mxu0 %v2815_v58  ;;  %2848 = vmatpush3.bf16.msra.mxu1 %v2847_v60  ;;  %v2891_v58 = vpack.c.bf16 %v1723_v50, %v1722_v57  ;;  %v1743_v9 = vld [vmem:[%s4317_s7 + $0x3a8] sm:$0xff]  ;;  %v1700_v57 = vld [vmem:[%s4317_s7 + $0x250] sm:$0xff] }
 0x420   :  { %v2989_v3 = vpop.eup %2988  ;;  %v176_v35 = vmul.f32 0.6931472, %v2987_v61  ;;  %v1654_v61 = vld [vmem:[%s4317_s7 + $0xe0] sm:$0xff] }
 0x421   :  { %v2991_v53 = vpop.eup %2990  ;;  %v174_v6 = vmul.f32 0.6931472, %v2989_v3  ;;  %v1686_v3 = vld [vmem:[%s4317_s7 + $0x1e0] sm:$0xff]  ;;  %v2817_v8 = vpack.c.bf16 %v1655_v62, %v1654_v61  ;;  %v2893_v61 = vpack.c.bf16 %v1741_v54, %v1740_v47  ;;  %v1724_v62 = vld [vmem:[%s4317_s7 + $0x310] sm:$0xff]  ;;  %v1719_v47 = vld [vmem:[%s4317_s7 + $0x2e8] sm:$0xff] }
 0x422   :  { %v2993_v4 = vpop.eup %2992  ;;  %v178_v13 = vmul.f32 0.6931472, %v2991_v53  ;;  %v1687_v53 = vld [vmem:[%s4317_s7 + $0x1e8] sm:$0xff] }
 0x423   :  { %v180_v18 = vmul.f32 0.6931472, %v2993_v4  ;;  %v2849_v4 = vpack.c.bf16 %v1687_v53, %v1686_v3  ;;  %2818 = vmatprep.subr.bf16.mxu0 %v2817_v8  ;;  %v1725_v3 = vld [vmem:[%s4317_s7 + $0x318] sm:$0xff]  ;;  %v2863_v8 = vpack.c.bf16 %v1693_v2, %v1692_v55  ;;  %v1742_v53 = vld [vmem:[%s4317_s7 + $0x3a0] sm:$0xff]  ;;  %v1751_v2 = vld [vmem:[%s4317_s7 + $0x3e8] sm:$0xff] }
 0x424   :  { %v2995_v21 = vpop.eup %2994  ;;  %2820 = vmatpush3.bf16.msra.mxu0 %v2819_v11  ;;  %v1694_v11 = vld [vmem:[%s4317_s7 + $0x220] sm:$0xff] }
 0x425   :  { %v2997_v22 = vpop.eup %2996  ;;  %v184_v29 = vmul.f32 0.6931472, %v2995_v21  ;;  %2850 = vmatprep.subr.bf16.mxu1 %v2849_v4  ;;  %v1641_v21 = vld [vmem:[%s4317_s7 + $0x78] sm:$0xff]  ;;  %v2865_v4 = vpack.c.bf16 %v1711_v0, %v1710_v59  ;;  %v1750_v55 = vld [vmem:[%s4317_s7 + $0x3e0] sm:$0xff]  ;;  %v1703_v59 = vld [vmem:[%s4317_s7 + $0x268] sm:$0xff] }
 0x426   :  { %v2999_v23 = vpop.eup %2998  ;;  %v182_v25 = vmul.f32 0.6931472, %v2997_v22  ;;  %v1672_v22 = vld [vmem:[%s4317_s7 + $0x170] sm:$0xff] }
 0x427   :  { %v3001_v24 = vpop.eup %3000  ;;  %v186_v26 = vmul.f32 0.6931472, %v2999_v23 }
 0x428   :  { %v188_v30 = vmul.f32 0.6931472, %v3001_v24  ;;  %v1673_v24 = vld [vmem:[%s4317_s7 + $0x178] sm:$0xff] }
 0x4b8   :  { %v1375_v14 = vpop.f32.mrb[8].mxu0  ;;  %v1446_v17 = vpop.f32.mrb[8].mxu1 }
 0x4b9   :  { %v3980_v7 = vadd.f32 %v1375_v14, %v174_v6  ;;  %v3982_v36 = vadd.f32 %v1446_v17, %v178_v13  ;;  %v1377_v5 = vpop.f32.mrb[9].mxu0  ;;  %v1448_v19 = vpop.f32.mrb[9].mxu1  ;;  %v1671_v6 = vld [vmem:[%s4317_s7 + $0x168] sm:$0xff]  ;;  %v1656_v13 = vld [vmem:[%s4317_s7 + $0xf0] sm:$0xff]  ;;  %v1657_v14 = vld [vmem:[%s4317_s7 + $0xf8] sm:$0xff] }
 0x4ba   :  { %v3984_v20 = vadd.f32 %v1377_v5, %v176_v35  ;;  %v3986_v16 = vadd.f32 %v1448_v19, %v180_v18  ;;  %v2851_v15 = vpack.c.bf16 %v1671_v6, %v1670_v12  ;;  %v1688_v17 = vld [vmem:[%s4317_s7 + $0x1f0] sm:$0xff]  ;;  %v1689_v35 = vld [vmem:[%s4317_s7 + $0x1f8] sm:$0xff]  ;;  %v2821_v18 = vpack.c.bf16 %v1657_v14, %v1656_v13  ;;  %v1695_v12 = vld [vmem:[%s4317_s7 + $0x228] sm:$0xff] }
 0x4bb   :  { %v2853_v5 = vpack.c.bf16 %v1689_v35, %v1688_v17  ;;  %v1640_v19 = vld [vmem:[%s4317_s7 + $0x70] sm:$0xff]  ;;  %v2895_v6 = vpack.c.bf16 %v1725_v3, %v1724_v62  ;;  %v2897_v17 = vpack.c.bf16 %v1743_v9, %v1742_v53  ;;  %v1726_v35 = vld [vmem:[%s4317_s7 + $0x320] sm:$0xff]  ;;  %v1721_v62 = vld [vmem:[%s4317_s7 + $0x2f8] sm:$0xff]  ;;  %v2913_v3 = vpack.c.bf16 %v1751_v2, %v1750_v55 }
 0x4bc   :  { %2852 = vmatpush3.bf16.msra.mxu1 %v2851_v15  ;;  %v2823_v23 = vpack.c.bf16 %v1641_v21, %v1640_v19  ;;  %2822 = vmatprep.subr.bf16.mxu0 %v2821_v18  ;;  %v1712_v13 = vld [vmem:[%s4317_s7 + $0x2b0] sm:$0xff]  ;;  %v1713_v15 = vld [vmem:[%s4317_s7 + $0x2b8] sm:$0xff]  ;;  %v1727_v18 = vld [vmem:[%s4317_s7 + $0x328] sm:$0xff] }
 0x4bd   :  { %2854 = vmatprep.subr.bf16.mxu1 %v2853_v5  ;;  %v2867_v5 = vpack.c.bf16 %v1695_v12, %v1694_v11  ;;  %v1744_v19 = vld [vmem:[%s4317_s7 + $0x3b0] sm:$0xff]  ;;  %v1745_v21 = vld [vmem:[%s4317_s7 + $0x3b8] sm:$0xff]  ;;  %v1735_v53 = vld [vmem:[%s4317_s7 + $0x368] sm:$0xff] }
 0x4be   :  { %2824 = vmatpush3.bf16.msra.mxu0 %v2823_v23  ;;  %v1696_v23 = vld [vmem:[%s4317_s7 + $0x230] sm:$0xff] }
 0x4bf   :  { %v1704_v12 = vld [vmem:[%s4317_s7 + $0x270] sm:$0xff] }
 0x4c8   :  { %v1517_v27 = vpop.f32.mrb[10].mxu0  ;;  %v1588_v28 = vpop.f32.mrb[10].mxu1 }
 0x4c9   :  { %v3988_v31 = vadd.f32 %v1517_v27, %v182_v25  ;;  %v3990_v32 = vadd.f32 %v1588_v28, %v186_v26  ;;  %v1519_v33 = vpop.f32.mrb[11].mxu0  ;;  %v1590_v34 = vpop.f32.mrb[11].mxu1  ;;  %v2855_v25 = vpack.c.bf16 %v1673_v24, %v1672_v22  ;;  %v1706_v26 = vld [vmem:[%s4317_s7 + $0x280] sm:$0xff]  ;;  %v1707_v27 = vld [vmem:[%s4317_s7 + $0x288] sm:$0xff]  ;;  %v2869_v22 = vpack.c.bf16 %v1713_v15, %v1712_v13  ;;  %v1697_v24 = vld [vmem:[%s4317_s7 + $0x238] sm:$0xff] }
 0x4ca   :  { %v3992_v37 = vadd.f32 %v1519_v33, %v184_v29  ;;  %v3994_v38 = vadd.f32 %v1590_v34, %v188_v30  ;;  %v1738_v28 = vld [vmem:[%s4317_s7 + $0x380] sm:$0xff]  ;;  %v2857_v29 = vpack.c.bf16 %v1707_v27, %v1706_v26  ;;  %v1739_v30 = vld [vmem:[%s4317_s7 + $0x388] sm:$0xff] }
 0x4cb   :  { %v1593_v39 = vmax.f32 %v3980_v7, %v3988_v31  ;;  %v1595_v40 = vmax.f32 %v3982_v36, %v3990_v32  ;;  %2856 = vmatpush3.bf16.msra.mxu1 %v2855_v25  ;;  %v2889_v33 = vpack.c.bf16 %v1739_v30, %v1738_v28  ;;  %v2899_v25 = vpack.c.bf16 %v1727_v18, %v1726_v35  ;;  %v1714_v26 = vld [vmem:[%s4317_s7 + $0x2c0] sm:$0xff]  ;;  %v1715_v27 = vld [vmem:[%s4317_s7 + $0x2c8] sm:$0xff]  ;;  %v1729_v30 = vld [vmem:[%s4317_s7 + $0x338] sm:$0xff] }
 0x4cc   :  { %v1594_v41 = vmax.f32 %v3984_v20, %v3992_v37  ;;  %v1596_v42 = vmax.f32 %v3986_v16, %v3994_v38  ;;  %2858 = vmatprep.subr.bf16.mxu0 %v2857_v29  ;;  %v2901_v28 = vpack.c.bf16 %v1745_v21, %v1744_v19  ;;  %v1728_v29 = vld [vmem:[%s4317_s7 + $0x330] sm:$0xff] }
 0x4cd   :  { %2890 = vmatprep.subr.bf16.mxu1 %v2889_v33  ;;  %v2871_v33 = vpack.c.bf16 %v1697_v24, %v1696_v23 }
 0x4ce   :  { %v1597_v44 = vmax.f32 %v1593_v39, %v1594_v41  ;;  %v1598_v43 = vmax.f32 %v1595_v40, %v1596_v42 }
 0x4d0   :  { %v1599_v45 = vmax.f32 %v1597_v44, %v1598_v43 }
 0x4d2   :  { %1600 = vmax.xlane.f32.xlu1 %v1599_v45 }
 0x55f   :  { %v4100_v34 = vpop.xlane.xlu1 %1600 }
 0x560   :  { %v1602_v39 = vsub.f32 %v3980_v7, %v4100_v34  ;;  %v1603_v40 = vsub.f32 %v3984_v20, %v4100_v34  ;;  %v1604_v41 = vsub.f32 %v3982_v36, %v4100_v34  ;;  %v1605_v42 = vsub.f32 %v3986_v16, %v4100_v34  ;;  %v1690_v36 = vld [vmem:[%s4317_s7 + $0x200] sm:$0xff]  ;;  %v1691_v16 = vld [vmem:[%s4317_s7 + $0x208] sm:$0xff] }
 0x561   :  { %v1607_v44 = vsub.f32 %v3992_v37, %v4100_v34  ;;  %v1609_v48 = vsub.f32 %v3994_v38, %v4100_v34  ;;  %v1708_v37 = vld [vmem:[%s4317_s7 + $0x290] sm:$0xff]  ;;  %v1709_v38 = vld [vmem:[%s4317_s7 + $0x298] sm:$0xff]  ;;  %v2859_v52 = vpack.c.bf16 %v1691_v16, %v1690_v36  ;;  %v1608_v50 = vsub.f32 %v3990_v32, %v4100_v34 }
 0x562   :  { %v1610_v43 = vmul.f32 1.442695, %v1602_v39  ;;  %v1612_v45 = vmul.f32 1.442695, %v1603_v40  ;;  %v1614_v46 = vmul.f32 1.442695, %v1604_v41  ;;  %v2861_v1 = vpack.c.bf16 %v1709_v38, %v1708_v37 }
 0x563   :  { %v1616_v49 = vmul.f32 1.442695, %v1605_v42  ;;  %v1620_v7 = vmul.f32 1.442695, %v1607_v44  ;;  %v1624_v20 = vmul.f32 1.442695, %v1609_v48  ;;  %v2873_v41 = vpack.c.bf16 %v1715_v27, %v1714_v26 }
 0x564   :  { %3002 = vpow2.f32 %v1610_v43  ;;  %v1746_v39 = vld [vmem:[%s4317_s7 + $0x3c0] sm:$0xff]  ;;  %v1747_v40 = vld [vmem:[%s4317_s7 + $0x3c8] sm:$0xff]  ;;  %v2903_v43 = vpack.c.bf16 %v1729_v30, %v1728_v29  ;;  %v1748_v16 = vld [vmem:[%s4317_s7 + $0x3d0] sm:$0xff]  ;;  %v1622_v0 = vmul.f32 1.442695, %v1608_v50 }
 0x565   :  { %3004 = vpow2.f32 %v1612_v45  ;;  %v1698_v42 = vld [vmem:[%s4317_s7 + $0x240] sm:$0xff]  ;;  %v1699_v44 = vld [vmem:[%s4317_s7 + $0x248] sm:$0xff]  ;;  %v1716_v45 = vld [vmem:[%s4317_s7 + $0x2d0] sm:$0xff]  ;;  %v2905_v48 = vpack.c.bf16 %v1747_v40, %v1746_v39 }
 0x566   :  { %3006 = vpow2.f32 %v1614_v46  ;;  %v1717_v46 = vld [vmem:[%s4317_s7 + $0x2d8] sm:$0xff]  ;;  %v2875_v36 = vpack.c.bf16 %v1699_v44, %v1698_v42 }
 0x567   :  { %3008 = vpow2.f32 %v1616_v49  ;;  %v1730_v49 = vld [vmem:[%s4317_s7 + $0x340] sm:$0xff]  ;;  %v1749_v37 = vld [vmem:[%s4317_s7 + $0x3d8] sm:$0xff]  ;;  %v2877_v38 = vpack.c.bf16 %v1717_v46, %v1716_v45 }
 0x568   :  { %3010 = vpow2.f32 %v1620_v7  ;;  %v1731_v7 = vld [vmem:[%s4317_s7 + $0x348] sm:$0xff]  ;;  %v2909_v54 = vpack.c.bf16 %v1749_v37, %v1748_v16  ;;  %v1733_v32 = vld [vmem:[%s4317_s7 + $0x358] sm:$0xff] }
 0x569   :  { %3012 = vpow2.f32 %v1624_v20  ;;  %v1606_v20 = vsub.f32 %v3988_v31, %v4100_v34  ;;  %v1701_v31 = vld [vmem:[%s4317_s7 + $0x258] sm:$0xff] }
 0x56b   :  { %v1618_v34 = vmul.f32 1.442695, %v1606_v20 }
 0x56d   :  { %3014 = vpow2.f32 %v1618_v34 }
 0x56e   :  { %v3003_v51 = vpop.eup %3002  ;;  %3016 = vpow2.f32 %v1622_v0 }
 0x56f   :  { %v3005_v63 = vpop.eup %3004 }
 0x570   :  { %v3007_v56 = vpop.eup %3006  ;;  %1818 = vmatprep.mubr.f32.mxu0 %v3005_v63  ;;  %v1732_v63 = vld [vmem:[%s4317_s7 + $0x350] sm:$0xff] }
 0x571   :  { %v3009_v60 = vpop.eup %3008  ;;  %1819 = vmatmul.mubr.f32.vlgmr.msra.gmra.mrb[12].mxu0 %v3003_v51  ;;  %v2907_v51 = vpack.c.bf16 %v1731_v7, %v1730_v49 }
 0x572   :  { %1888 = vmatprep.mubr.f32.mxu1 %v3009_v60  ;;  %2860 = vmatpush3.bf16.msra.mxu0 %v2859_v52  ;;  %v3011_v10 = vpop.eup %3010  ;;  %v1718_v52 = vld [vmem:[%s4317_s7 + $0x2e0] sm:$0xff]  ;;  %v2911_v60 = vpack.c.bf16 %v1733_v32, %v1732_v63 }
 0x573   :  { %1889 = vmatmul.mubr.f32.vlgmr.msra.gmra.mrb[12].mxu1 %v3007_v56  ;;  %2862 = vmatprep.subr.bf16.mxu0 %v2861_v1  ;;  %v3013_v14 = vpop.eup %3012  ;;  %v2879_v1 = vpack.c.bf16 %v1701_v31, %v1700_v57  ;;  %v2881_v56 = vpack.c.bf16 %v1719_v47, %v1718_v52 }
 0x574   :  { %2892 = vmatpush3.bf16.msra.mxu1 %v2891_v58  ;;  %1958 = vmatprep.mubr.f32.mxu0 %v3011_v10  ;;  %v1702_v58 = vld [vmem:[%s4317_s7 + $0x260] sm:$0xff]  ;;  %v1752_v10 = vld [vmem:[%s4317_s7 + $0x3f0] sm:$0xff] }
 0x575   :  { %2894 = vmatprep.subr.bf16.mxu1 %v2893_v61  ;;  %2028 = vmatprep.mubr.f32.mxu1 %v3013_v14  ;;  %v1720_v61 = vld [vmem:[%s4317_s7 + $0x2f0] sm:$0xff]  ;;  %v2883_v9 = vpack.c.bf16 %v1703_v59, %v1702_v58 }
 0x576   :  { %2864 = vmatpush3.bf16.msra.mxu0 %v2863_v8  ;;  %v1734_v8 = vld [vmem:[%s4317_s7 + $0x360] sm:$0xff]  ;;  %v2885_v11 = vpack.c.bf16 %v1721_v62, %v1720_v61  ;;  %v1736_v14 = vld [vmem:[%s4317_s7 + $0x370] sm:$0xff] }
 0x577   :  { %2866 = vmatprep.subr.bf16.mxu0 %v2865_v4  ;;  %v1753_v4 = vld [vmem:[%s4317_s7 + $0x3f8] sm:$0xff]  ;;  %v2915_v13 = vpack.c.bf16 %v1735_v53, %v1734_v8 }
 0x578   :  { %2896 = vmatpush3.bf16.msra.mxu1 %v2895_v6  ;;  %v1705_v6 = vld [vmem:[%s4317_s7 + $0x278] sm:$0xff]  ;;  %v2917_v15 = vpack.c.bf16 %v1753_v4, %v1752_v10 }
 0x579   :  { %2898 = vmatprep.subr.bf16.mxu1 %v2897_v17  ;;  %v1737_v17 = vld [vmem:[%s4317_s7 + $0x378] sm:$0xff]  ;;  %v2887_v35 = vpack.c.bf16 %v1705_v6, %v1704_v12  ;;  %s3098_s7 = smov [#allocation7]  }
 0x57a   :  { %2868 = vmatpush3.bf16.msra.mxu0 %v2867_v5  ;;  %v2919_v18 = vpack.c.bf16 %v1737_v17, %v1736_v14  ;;  %v3015_v5 = vpop.eup %3014  ;;  %s2051_s9 = sshll.u32 %s3098_s7, 4  ;;  %s2052_s9 = int_to_ptr.vmem [resolvable:$true] %s2051_s9 }
 0x57b   :  { %2870 = vmatprep.subr.bf16.mxu0 %v2869_v22  ;;  %v3017_v19 = vpop.eup %3016  ;;  %s3064_s10 = scalar_lea.vmem %s2052_s9, 128  ;;  %p3069_p3 = scmp.lt.s32.totalorder %s2052_s9, %s2052_s9 }
 0x57c   :  { %2900 = vmatpush3.bf16.msra.mxu1 %v2899_v25  ;;  %p3065_p2 = scmp.ne.s32.totalorder %s2052_s9, %s3064_s10  ;;  %p3070_p4 = scmp.lt.s32.totalorder %s3064_s10, %s3064_s10 }
 0x57d   :  { %2902 = vmatprep.subr.bf16.mxu1 %v2901_v28 }
 0x57e   :  { %2872 = vmatpush3.bf16.msra.mxu0 %v2871_v33  ;;  %p3071_p5 = por %p3070_p4, %p3069_p3 }
 0x57f   :  { %2874 = vmatprep.subr.bf16.mxu0 %v2873_v41 }
 0x580   :  { %2904 = vmatpush3.bf16.msra.mxu1 %v2903_v43  ;;  %p3072_p6 = pnand %p3071_p5, %p3065_p2 }
 0x581   :  { %2906 = vmatprep.subr.bf16.mxu1 %v2905_v48 }
 0x582   :  { %2876 = vmatpush3.bf16.msra.mxu0 %v2875_v36 }
 0x583   :  { %2878 = vmatprep.subr.bf16.mxu0 %v2877_v38 }
 0x584   :  { %2908 = vmatpush3.bf16.msra.mxu1 %v2907_v51 }
 0x585   :  { %2910 = vmatprep.subr.bf16.mxu1 %v2909_v54 }
 0x586   :  { %2880 = vmatpush3.bf16.msra.mxu0 %v2879_v1 }
 0x587   :  { %2882 = vmatprep.subr.bf16.mxu0 %v2881_v56 }
 0x588   :  { %2912 = vmatpush3.bf16.msra.mxu1 %v2911_v60 }
 0x589   :  { %2914 = vmatprep.subr.bf16.mxu1 %v2913_v3 }
 0x58a   :  { %2884 = vmatpush3.bf16.msra.mxu0 %v2883_v9 }
 0x58b   :  { %2886 = vmatprep.subr.bf16.mxu0 %v2885_v11 }
 0x58c   :  { %2916 = vmatpush3.bf16.msra.mxu1 %v2915_v13 }
 0x58d   :  { %2918 = vmatprep.subr.bf16.mxu1 %v2917_v15 }
 0x58e   :  { %2888 = vmatpush3.bf16.msra.mxu0 %v2887_v35 }
 0x590   :  { %2920 = vmatpush3.bf16.msra.mxu1 %v2919_v18 }
 0x591   :  { %1959 = vmatmul.mubr.f32.vlgmr.msra.gmra.mrb[14].mxu0 %v3015_v5 }
 0x593   :  { %2029 = vmatmul.mubr.f32.vlgmr.msra.gmra.mrb[14].mxu1 %v3017_v19 }
 0x644   :  { %v2237_v21 = vpop.f32.mrb[12].mxu0 }
 0x645   :  { %v2238_v22 = vpop.f32.mrb[13].mxu0 }
 0x646   :  { %v2272_v23 = vpop.f32.mrb[12].mxu1  ;;  %v2239_v24 = vadd.f32 %v2238_v22, %v2237_v21 }
 0x647   :  { %v2273_v25 = vpop.f32.mrb[13].mxu1 }
 0x648   :  { %v2274_v26 = vadd.f32 %v2273_v25, %v2272_v23 }
 0x64a   :  { %v1891_v27 = vadd.f32 %v2274_v26, %v2239_v24 }
 0x664   :  { %v2307_v28 = vpop.f32.mrb[14].mxu0 }
 0x665   :  { %v2308_v29 = vpop.f32.mrb[15].mxu0 }
 0x666   :  { %v2342_v30 = vpop.f32.mrb[14].mxu1  ;;  %v2309_v33 = vadd.f32 %v2308_v29, %v2307_v28 }
 0x667   :  { %v2343_v39 = vpop.f32.mrb[15].mxu1 }
 0x668   :  { %v1961_v40 = vadd.f32 %v2309_v33, %v1891_v27  ;;  %v2344_v41 = vadd.f32 %v2343_v39, %v2342_v30 }
 0x66a   :  { %v2031_v42 = vadd.f32 %v2344_v41, %v1961_v40 }
 0x66c   :  { %3018 = vrcp.f32 %v2031_v42 }
 0x676   :  { %v3019_v44 = vpop.eup %3018 }
 0x677   :  { %v2035_v43 = vmul.f32 %v3019_v44, %v2031_v42 }
 0x679   :  { %v2036_v45 = vsub.f32 2.0, %v2035_v43 }
 0x67b   :  { %v2037_v46 = vmul.f32 %v3019_v44, %v2036_v45 }
 0x67d   :  { %2040 = vperm.xlu0 %2928, %v2037_v46  }
 0x6fc   :  { %v2041_v48 = vpop.permute.xlu0 %2040 }
 0x6fd   :  { %v2043_v49 = vmul.f32 %v2041_v48, %v2031_v42 }
 0x6ff   :  { %2044 = vst [vmem:[#allocation7] sm:$0xff] %v2043_v49 }
 0x700   :  { %3075 = shalt.err (!%p3072_p6)
}
 0x701   :  { %s3076_s13 = scalar_lea.hbm %s4318_s8, 128 }
 0x702   :  { %p3077_p7 = scmp.ne.s32.totalorder %s4318_s8, %s3076_s13  ;;  %p3080_p8 = scmp.lt.u32.totalorder %s3076_s13, %s4318_s8 }
 0x704   :  { %p3082_p9 = pnand %p3080_p8, %p3077_p7 }
 0x706   :  { %3085 = shalt.err (!%p3082_p9)
}
 0x707   :  { %2054 = dma.vmem_to_hbm [thread:$0]  %s2052_s9, 128, %s4318_s8, [#allocation4]  }
 0x708   :  { %3090 = dma.done.wait [#allocation4], 128  }
 0x709   :  { %3091 = vsyncadd [#allocation4], 4294967168 }
 0x70a   :  { %2058 = vsyncpa [#allocation3], 1 }
 0x70b   :  { %2059 = vsyncpa [#allocation6], 1 }
 0x70c   :  { %2060 = vsyncpa [#allocation4], 1 }

</bundles_post_ra>
